<compile_context>
chip_gen: v7x
topology: tpu7x:2x2x1
jax: 0.10.0
libtpu: 0.0.40
codegen_flags: <defaults>
</compile_context>

<pallas_src>
import math

import jax
import jax.numpy as jnp
from jax.experimental import pallas as pl
from jax.experimental.pallas import tpu as pltpu


# ----------------------------------------------------------------------------
# Fused per-graph kernel body.  One grid step = one graph; all weights are
# resident (constant index_map).  Only out / logits are written back.
# ----------------------------------------------------------------------------
def graphnet_kernel(adj_ref, x_ref,
                    wlr1_ref, b1_ref, wlr2_ref, b2_ref, wlr3_ref, b3_ref,
                    wlr4_ref, b4_ref, wlr5_ref, b5_ref,
                    wg_ref, bg_ref, wc_ref, bc_ref,
                    out_ref, logits_ref):
    adj = adj_ref[...]                       # [N, N]   bf16 row-normalized mean weights
    h = x_ref[...]                           # [N, C_in] bf16

    def sage_relu(h_bf16, wlr_ref, b_ref):
        c_out = b_ref.shape[-1]
        # One wide MXU pass: [N, C_in] @ [C_in, 2*C_out]  (bf16 in, f32 acc)
        y = jnp.dot(h_bf16, wlr_ref[...], preferred_element_type=jnp.float32)
        y_l = y[:, :c_out]                   # X @ W_l
        y_r = y[:, c_out:]                   # X @ W_r
        # A @ (X @ W_l) == (A @ X) @ W_l ; bf16 operands, f32 accumulation.
        agg = jnp.dot(adj, y_l.astype(jnp.bfloat16),
                      preferred_element_type=jnp.float32)
        hf = jnp.maximum(agg + y_r + b_ref[...], 0.0)      # f32 elementwise
        return hf.astype(jnp.bfloat16), hf

    h, _ = sage_relu(h, wlr1_ref, b1_ref)
    h, _ = sage_relu(h, wlr2_ref, b2_ref)
    h, _ = sage_relu(h, wlr3_ref, b3_ref)
    h, _ = sage_relu(h, wlr4_ref, b4_ref)
    _, x5 = sage_relu(h, wlr5_ref, b5_ref)   # x5 f32 [N, nhid] (pool path kept f32)

    # Collapsed gate: reference applies tanh/sigmoid only AFTER the two Linear
    # layers, so the two layers were folded into w_gate/b_gate at init time.
    # Computed on VPU (broadcast-mul) + XLU (lane reduce); the MXU version
    # would pay K weight-push cycles for 2 useful output lanes.
    wg = wg_ref[...]                                         # [2, nhid] f32
    bg = bg_ref[...]                                         # [1, 2]    f32
    ga = jnp.sum(x5 * wg[0:1, :], axis=-1, keepdims=True) + bg[:, 0:1]   # [N, 1]
    gb = jnp.sum(x5 * wg[1:2, :], axis=-1, keepdims=True) + bg[:, 1:2]   # [N, 1]
    w = jnp.tanh(ga) * jax.nn.sigmoid(gb)                                # [N, 1]

    # softmax over the N nodes (f32)
    w = w - jnp.max(w, axis=0, keepdims=True)
    p = jnp.exp(w)
    p = p / jnp.sum(p, axis=0, keepdims=True)

    out = jnp.sum(p * x5, axis=0, keepdims=True)             # [1, nhid] == softmax @ x5
    out_ref[...] = out
    logits_ref[...] = (jnp.dot(out.astype(jnp.bfloat16), wc_ref[...],
                               preferred_element_type=jnp.float32)
                       + bc_ref[...])


# ----------------------------------------------------------------------------
# Wrapper: one pallas_call over a grid of B graphs; weights resident in VMEM.
#   x   : [B, N, C_in]  f32 (cast to bf16 here)
#   adj : [B, N, N]     f32 (cast to bf16 here)
# Returns (out, out, logits) with out [B, 1, nhid], logits [B, 1, n_classes],
# matching the original per-graph (1, nhid)/(1, n_classes) semantics per b.
# ----------------------------------------------------------------------------
def graphnet_forward(params, x, adj):
    B, N, c_in = x.shape
    nhid = params["wg"].shape[1]
    n_classes = params["bc"].shape[1]

    weights = [params[k] for k in
               ("wlr1", "b1", "wlr2", "b2", "wlr3", "b3", "wlr4", "b4",
                "wlr5", "b5", "wg", "bg", "wc", "bc")]

    def resident(arr):
        nd = arr.ndim
        # Constant block index -> DMA'd once, stays in VMEM for all grid steps.
        return pl.BlockSpec(arr.shape, lambda b, _nd=nd: (0,) * _nd)

    in_specs = ([pl.BlockSpec((None, N, N), lambda b: (b, 0, 0)),      # adj[b]
                 pl.BlockSpec((None, N, c_in), lambda b: (b, 0, 0))]   # x[b]
                + [resident(w) for w in weights])
    out_specs = (pl.BlockSpec((None, 1, nhid), lambda b: (b, 0, 0)),
                 pl.BlockSpec((None, 1, n_classes), lambda b: (b, 0, 0)))

    # Advisory cost estimate so XLA can schedule surrounding ops around the call.
    conv_dims = [(c_in, 256), (256, nhid), (nhid, nhid), (nhid, nhid), (nhid, nhid)]
    flops_per_graph = sum(2 * N * ci * 2 * co + 2 * N * N * co for ci, co in conv_dims)
    flops_per_graph += 2 * N * nhid * 2 + 2 * N * nhid + 2 * nhid * n_classes
    bytes_accessed = (sum(int(w.size) * w.dtype.itemsize for w in weights)
                      + int(x.size) * 2 + int(adj.size) * 2
                      + B * (nhid + n_classes) * 4)
    cost = pl.CostEstimate(flops=int(B * flops_per_graph),
                           transcendentals=int(B * 3 * N),
                           bytes_accessed=int(bytes_accessed))

    out, logits = pl.pallas_call(
        graphnet_kernel,
        grid=(B,),
        out_shape=(jax.ShapeDtypeStruct((B, 1, nhid), jnp.float32),
                   jax.ShapeDtypeStruct((B, 1, n_classes), jnp.float32)),
        in_specs=in_specs,
        out_specs=out_specs,
        compiler_params=pltpu.CompilerParams(
            dimension_semantics=("parallel",),          # shard graphs across v7x TCs
            vmem_limit_bytes=32 * 1024 * 1024),
        cost_estimate=cost,
    )(adj.astype(jnp.bfloat16), x.astype(jnp.bfloat16), *weights)
    return out, out, logits


# ----------------------------------------------------------------------------
# Glue: dense mean-aggregation adjacency from edge_index (PyG convention:
# edge_index[0] = source j, edge_index[1] = target i; message flows j -> i).
# ----------------------------------------------------------------------------
def build_mean_adj(edge_index, num_nodes):
    src, dst = edge_index[0], edge_index[1]
    adj = jnp.zeros((num_nodes, num_nodes), jnp.float32).at[dst, src].add(1.0)
    deg = jnp.maximum(jnp.sum(adj, axis=1, keepdims=True), 1.0)
    return adj / deg


# ----------------------------------------------------------------------------
# Deterministic parameter init (PyTorch-Linear-style uniform bounds), with all
# fusion-friendly packing done ONCE here:
#   wlr_i  = [W_l | W_r]                      (bf16, one wide matmul per layer)
#   w_gate = [Wa1@wa2 | Wb1@wb2]^T  [2,nhid]  (exact collapse: no nonlinearity
#   b_gate = [ba1@wa2+ba2 | bb1@wb2+bb2]       between the two gate Linears)
# ----------------------------------------------------------------------------
def _uniform(key, shape, bound):
    return jax.random.uniform(key, shape, jnp.float32, -bound, bound)


def _init_linear(key, fan_in, fan_out):
    kw, kb = jax.random.split(key)
    bound = 1.0 / math.sqrt(fan_in)
    return _uniform(kw, (fan_in, fan_out), bound), _uniform(kb, (1, fan_out), bound)


def init_params(key, feature_length, nhid, n_classes):
    params = {}
    keys = jax.random.split(key, 7)

    conv_dims = [(feature_length, 256), (256, nhid), (nhid, nhid), (nhid, nhid), (nhid, nhid)]
    for i, (cin, cout) in enumerate(conv_dims):
        kl, kr = jax.random.split(keys[i])
        w_l, b = _init_linear(kl, cin, cout)         # lin_l (with bias)
        w_r, _ = _init_linear(kr, cin, cout)         # lin_r (no bias)
        params[f"wlr{i + 1}"] = jnp.concatenate([w_l, w_r], axis=1).astype(jnp.bfloat16)
        params[f"b{i + 1}"] = b                      # f32

    # Aggregation_model gates: Sequential(Linear, Linear, Tanh/Sigmoid) ->
    # collapse the two Linears exactly (f32) at init.
    ka1, ka2, kb1, kb2 = jax.random.split(keys[5], 4)
    wa1, ba1 = _init_linear(ka1, nhid, nhid)
    wa2, ba2 = _init_linear(ka2, nhid, 1)
    wb1, bb1 = _init_linear(kb1, nhid, nhid)
    wb2, bb2 = _init_linear(kb2, nhid, 1)
    wga = wa1 @ wa2                                  # [nhid, 1]
    wgb = wb1 @ wb2                                  # [nhid, 1]
    bga = ba1 @ wa2 + ba2                            # [1, 1]
    bgb = bb1 @ wb2 + bb2                            # [1, 1]
    params["wg"] = jnp.concatenate([wga, wgb], axis=1).T     # [2, nhid] f32, lane-dense
    params["bg"] = jnp.concatenate([bga, bgb], axis=1)       # [1, 2]    f32

    wc, bc = _init_linear(keys[6], nhid, n_classes)
    params["wc"] = wc.astype(jnp.bfloat16)           # [nhid, n_classes]
    params["bc"] = bc                                # [1, n_classes] f32
    return params


if __name__ == "__main__":
    B = 4                  # graphs per batched call
    N = 16                 # nodes per graph
    feature_length = 128   # input node-feature dim (module default)
    nhid = 256             # hidden dim (small but (8,128)-friendly)
    n_classes = 2

    key = jax.random.PRNGKey(0)
    k_x, k_e, k_p = jax.random.split(key, 3)

    # node features
    x = jax.random.normal(k_x, (B, N, feature_length), dtype=jnp.float32)

    # deterministic small graphs: bidirectional ring + a few extra edges each
    ring_src = jnp.arange(N)
    ring_dst = (jnp.arange(N) + 1) % N
    e_keys = jax.random.split(k_e, B)
    adjs = []
    for b in range(B):
        extra_src = jax.random.randint(e_keys[b], (8,), 0, N)
        extra_dst = (extra_src + 3 + b) % N
        src = jnp.concatenate([ring_src, ring_dst, extra_src])
        dst = jnp.concatenate([ring_dst, ring_src, extra_dst])
        edge_index = jnp.stack([src, dst]).astype(jnp.int32)   # [2, E]
        adjs.append(build_mean_adj(edge_index, N))
    adj = jnp.stack(adjs)                                       # [B, N, N]

    params = init_params(k_p, feature_length, nhid, n_classes)

    out, out2, logits = graphnet_forward(params, x, adj)
    jax.block_until_ready((out, out2, logits))

    assert out.shape == (B, 1, nhid)
    assert logits.shape == (B, 1, n_classes)
    assert bool(jnp.all(jnp.isfinite(out))) and bool(jnp.all(jnp.isfinite(logits)))
    print("KERNEL_OK")
</pallas_src>

<mosaic_0001>
module attributes {stable_mosaic.version = 11 : i64} {
  func.func @graphnet_kernel(%arg0: i32, %arg1: memref<1x16x16xbf16, #tpu.memory_space<vmem>>, %arg2: memref<1x16x128xbf16, #tpu.memory_space<vmem>>, %arg3: memref<128x512xbf16, #tpu.memory_space<vmem>>, %arg4: memref<1x256xf32, #tpu.memory_space<vmem>>, %arg5: memref<256x512xbf16, #tpu.memory_space<vmem>>, %arg6: memref<1x256xf32, #tpu.memory_space<vmem>>, %arg7: memref<256x512xbf16, #tpu.memory_space<vmem>>, %arg8: memref<1x256xf32, #tpu.memory_space<vmem>>, %arg9: memref<256x512xbf16, #tpu.memory_space<vmem>>, %arg10: memref<1x256xf32, #tpu.memory_space<vmem>>, %arg11: memref<256x512xbf16, #tpu.memory_space<vmem>>, %arg12: memref<1x256xf32, #tpu.memory_space<vmem>>, %arg13: memref<2x256xf32, #tpu.memory_space<vmem>>, %arg14: memref<1x2xf32, #tpu.memory_space<vmem>>, %arg15: memref<256x2xbf16, #tpu.memory_space<vmem>>, %arg16: memref<1x2xf32, #tpu.memory_space<vmem>>, %arg17: memref<1x1x256xf32, #tpu.memory_space<vmem>>, %arg18: memref<1x1x2xf32, #tpu.memory_space<vmem>>) attributes {dimension_semantics = [#tpu.dimension_semantics<parallel>], iteration_bounds = array<i64: 4>, scalar_prefetch = 0 : i64, scratch_operands = 0 : i64, tpu.core_type = #tpu.core_type<tc>, window_params = [{transform_indices = @transform_0, window_bounds = array<i64: 1, 16, 16>}, {transform_indices = @transform_1, window_bounds = array<i64: 1, 16, 128>}, {pipeline_mode = #tpu.pipeline_mode<synchronous>, transform_indices = @transform_2, window_bounds = array<i64: 128, 512>}, {pipeline_mode = #tpu.pipeline_mode<synchronous>, transform_indices = @transform_3, window_bounds = array<i64: 1, 256>}, {pipeline_mode = #tpu.pipeline_mode<synchronous>, transform_indices = @transform_4, window_bounds = array<i64: 256, 512>}, {pipeline_mode = #tpu.pipeline_mode<synchronous>, transform_indices = @transform_5, window_bounds = array<i64: 1, 256>}, {pipeline_mode = #tpu.pipeline_mode<synchronous>, transform_indices = @transform_6, window_bounds = array<i64: 256, 512>}, {pipeline_mode = #tpu.pipeline_mode<synchronous>, transform_indices = @transform_7, window_bounds = array<i64: 1, 256>}, {pipeline_mode = #tpu.pipeline_mode<synchronous>, transform_indices = @transform_8, window_bounds = array<i64: 256, 512>}, {pipeline_mode = #tpu.pipeline_mode<synchronous>, transform_indices = @transform_9, window_bounds = array<i64: 1, 256>}, {pipeline_mode = #tpu.pipeline_mode<synchronous>, transform_indices = @transform_10, window_bounds = array<i64: 256, 512>}, {pipeline_mode = #tpu.pipeline_mode<synchronous>, transform_indices = @transform_11, window_bounds = array<i64: 1, 256>}, {pipeline_mode = #tpu.pipeline_mode<synchronous>, transform_indices = @transform_12, window_bounds = array<i64: 2, 256>}, {pipeline_mode = #tpu.pipeline_mode<synchronous>, transform_indices = @transform_13, window_bounds = array<i64: 1, 2>}, {pipeline_mode = #tpu.pipeline_mode<synchronous>, transform_indices = @transform_14, window_bounds = array<i64: 256, 2>}, {pipeline_mode = #tpu.pipeline_mode<synchronous>, transform_indices = @transform_15, window_bounds = array<i64: 1, 2>}, {transform_indices = @transform_16, window_bounds = array<i64: 1, 1, 256>}, {transform_indices = @transform_17, window_bounds = array<i64: 1, 1, 2>}]} {
    %c0 = arith.constant 0 : index
    %c0_0 = arith.constant 0 : index
    %c0_1 = arith.constant 0 : index
    %0 = vector.load %arg1[%c0, %c0_0, %c0_1] : memref<1x16x16xbf16, #tpu.memory_space<vmem>>, vector<1x16x16xbf16>
    %1 = vector.shape_cast %0 : vector<1x16x16xbf16> to vector<16x16xbf16>
    %c0_2 = arith.constant 0 : index
    %c0_3 = arith.constant 0 : index
    %c0_4 = arith.constant 0 : index
    %2 = vector.load %arg2[%c0_2, %c0_3, %c0_4] : memref<1x16x128xbf16, #tpu.memory_space<vmem>>, vector<1x16x128xbf16>
    %3 = vector.shape_cast %2 : vector<1x16x128xbf16> to vector<16x128xbf16>
    %c0_5 = arith.constant 0 : index
    %c0_6 = arith.constant 0 : index
    %4 = vector.load %arg3[%c0_5, %c0_6] : memref<128x512xbf16, #tpu.memory_space<vmem>>, vector<128x512xbf16>
    %cst = arith.constant dense<0.000000e+00> : vector<16x512xf32>
    %5 = tpu.matmul %3, %4, %cst {dimension_numbers = #tpu.dot_dimension_numbers<[1], [0], [0], [1], [0, 0, 1, 1], [], []>} : vector<16x128xbf16>, vector<128x512xbf16>, vector<16x512xf32> -> vector<16x512xf32>
    %6 = vector.extract_strided_slice %5 {offsets = [0, 0], sizes = [16, 256], strides = [1, 1]} : vector<16x512xf32> to vector<16x256xf32>
    %7 = vector.extract_strided_slice %5 {offsets = [0, 256], sizes = [16, 256], strides = [1, 1]} : vector<16x512xf32> to vector<16x256xf32>
    %8 = arith.truncf %6 : vector<16x256xf32> to vector<16x256xbf16>
    %cst_7 = arith.constant dense<0.000000e+00> : vector<16x256xf32>
    %9 = tpu.matmul %1, %8, %cst_7 {dimension_numbers = #tpu.dot_dimension_numbers<[1], [0], [0], [1], [0, 0, 1, 1], [], []>} : vector<16x16xbf16>, vector<16x256xbf16>, vector<16x256xf32> -> vector<16x256xf32>
    %10 = arith.addf %9, %7 : vector<16x256xf32>
    %c0_8 = arith.constant 0 : index
    %c0_9 = arith.constant 0 : index
    %11 = vector.load %arg4[%c0_8, %c0_9] : memref<1x256xf32, #tpu.memory_space<vmem>>, vector<1x256xf32>
    %12 = vector.broadcast %11 : vector<1x256xf32> to vector<16x256xf32>
    %13 = arith.addf %10, %12 : vector<16x256xf32>
    %cst_10 = arith.constant 0.000000e+00 : f32
    %14 = vector.broadcast %cst_10 : f32 to vector<16x256xf32>
    %15 = arith.maximumf %13, %14 : vector<16x256xf32>
    %16 = arith.truncf %15 : vector<16x256xf32> to vector<16x256xbf16>
    %c0_11 = arith.constant 0 : index
    %c0_12 = arith.constant 0 : index
    %17 = vector.load %arg5[%c0_11, %c0_12] : memref<256x512xbf16, #tpu.memory_space<vmem>>, vector<256x512xbf16>
    %cst_13 = arith.constant dense<0.000000e+00> : vector<16x512xf32>
    %18 = tpu.matmul %16, %17, %cst_13 {dimension_numbers = #tpu.dot_dimension_numbers<[1], [0], [0], [1], [0, 0, 1, 1], [], []>} : vector<16x256xbf16>, vector<256x512xbf16>, vector<16x512xf32> -> vector<16x512xf32>
    %19 = vector.extract_strided_slice %18 {offsets = [0, 0], sizes = [16, 256], strides = [1, 1]} : vector<16x512xf32> to vector<16x256xf32>
    %20 = vector.extract_strided_slice %18 {offsets = [0, 256], sizes = [16, 256], strides = [1, 1]} : vector<16x512xf32> to vector<16x256xf32>
    %21 = arith.truncf %19 : vector<16x256xf32> to vector<16x256xbf16>
    %cst_14 = arith.constant dense<0.000000e+00> : vector<16x256xf32>
    %22 = tpu.matmul %1, %21, %cst_14 {dimension_numbers = #tpu.dot_dimension_numbers<[1], [0], [0], [1], [0, 0, 1, 1], [], []>} : vector<16x16xbf16>, vector<16x256xbf16>, vector<16x256xf32> -> vector<16x256xf32>
    %23 = arith.addf %22, %20 : vector<16x256xf32>
    %c0_15 = arith.constant 0 : index
    %c0_16 = arith.constant 0 : index
    %24 = vector.load %arg6[%c0_15, %c0_16] : memref<1x256xf32, #tpu.memory_space<vmem>>, vector<1x256xf32>
    %25 = vector.broadcast %24 : vector<1x256xf32> to vector<16x256xf32>
    %26 = arith.addf %23, %25 : vector<16x256xf32>
    %cst_17 = arith.constant 0.000000e+00 : f32
    %27 = vector.broadcast %cst_17 : f32 to vector<16x256xf32>
    %28 = arith.maximumf %26, %27 : vector<16x256xf32>
    %29 = arith.truncf %28 : vector<16x256xf32> to vector<16x256xbf16>
    %c0_18 = arith.constant 0 : index
    %c0_19 = arith.constant 0 : index
    %30 = vector.load %arg7[%c0_18, %c0_19] : memref<256x512xbf16, #tpu.memory_space<vmem>>, vector<256x512xbf16>
    %cst_20 = arith.constant dense<0.000000e+00> : vector<16x512xf32>
    %31 = tpu.matmul %29, %30, %cst_20 {dimension_numbers = #tpu.dot_dimension_numbers<[1], [0], [0], [1], [0, 0, 1, 1], [], []>} : vector<16x256xbf16>, vector<256x512xbf16>, vector<16x512xf32> -> vector<16x512xf32>
    %32 = vector.extract_strided_slice %31 {offsets = [0, 0], sizes = [16, 256], strides = [1, 1]} : vector<16x512xf32> to vector<16x256xf32>
    %33 = vector.extract_strided_slice %31 {offsets = [0, 256], sizes = [16, 256], strides = [1, 1]} : vector<16x512xf32> to vector<16x256xf32>
    %34 = arith.truncf %32 : vector<16x256xf32> to vector<16x256xbf16>
    %cst_21 = arith.constant dense<0.000000e+00> : vector<16x256xf32>
    %35 = tpu.matmul %1, %34, %cst_21 {dimension_numbers = #tpu.dot_dimension_numbers<[1], [0], [0], [1], [0, 0, 1, 1], [], []>} : vector<16x16xbf16>, vector<16x256xbf16>, vector<16x256xf32> -> vector<16x256xf32>
    %36 = arith.addf %35, %33 : vector<16x256xf32>
    %c0_22 = arith.constant 0 : index
    %c0_23 = arith.constant 0 : index
    %37 = vector.load %arg8[%c0_22, %c0_23] : memref<1x256xf32, #tpu.memory_space<vmem>>, vector<1x256xf32>
    %38 = vector.broadcast %37 : vector<1x256xf32> to vector<16x256xf32>
    %39 = arith.addf %36, %38 : vector<16x256xf32>
    %cst_24 = arith.constant 0.000000e+00 : f32
    %40 = vector.broadcast %cst_24 : f32 to vector<16x256xf32>
    %41 = arith.maximumf %39, %40 : vector<16x256xf32>
    %42 = arith.truncf %41 : vector<16x256xf32> to vector<16x256xbf16>
    %c0_25 = arith.constant 0 : index
    %c0_26 = arith.constant 0 : index
    %43 = vector.load %arg9[%c0_25, %c0_26] : memref<256x512xbf16, #tpu.memory_space<vmem>>, vector<256x512xbf16>
    %cst_27 = arith.constant dense<0.000000e+00> : vector<16x512xf32>
    %44 = tpu.matmul %42, %43, %cst_27 {dimension_numbers = #tpu.dot_dimension_numbers<[1], [0], [0], [1], [0, 0, 1, 1], [], []>} : vector<16x256xbf16>, vector<256x512xbf16>, vector<16x512xf32> -> vector<16x512xf32>
    %45 = vector.extract_strided_slice %44 {offsets = [0, 0], sizes = [16, 256], strides = [1, 1]} : vector<16x512xf32> to vector<16x256xf32>
    %46 = vector.extract_strided_slice %44 {offsets = [0, 256], sizes = [16, 256], strides = [1, 1]} : vector<16x512xf32> to vector<16x256xf32>
    %47 = arith.truncf %45 : vector<16x256xf32> to vector<16x256xbf16>
    %cst_28 = arith.constant dense<0.000000e+00> : vector<16x256xf32>
    %48 = tpu.matmul %1, %47, %cst_28 {dimension_numbers = #tpu.dot_dimension_numbers<[1], [0], [0], [1], [0, 0, 1, 1], [], []>} : vector<16x16xbf16>, vector<16x256xbf16>, vector<16x256xf32> -> vector<16x256xf32>
    %49 = arith.addf %48, %46 : vector<16x256xf32>
    %c0_29 = arith.constant 0 : index
    %c0_30 = arith.constant 0 : index
    %50 = vector.load %arg10[%c0_29, %c0_30] : memref<1x256xf32, #tpu.memory_space<vmem>>, vector<1x256xf32>
    %51 = vector.broadcast %50 : vector<1x256xf32> to vector<16x256xf32>
    %52 = arith.addf %49, %51 : vector<16x256xf32>
    %cst_31 = arith.constant 0.000000e+00 : f32
    %53 = vector.broadcast %cst_31 : f32 to vector<16x256xf32>
    %54 = arith.maximumf %52, %53 : vector<16x256xf32>
    %55 = arith.truncf %54 : vector<16x256xf32> to vector<16x256xbf16>
    %c0_32 = arith.constant 0 : index
    %c0_33 = arith.constant 0 : index
    %56 = vector.load %arg11[%c0_32, %c0_33] : memref<256x512xbf16, #tpu.memory_space<vmem>>, vector<256x512xbf16>
    %cst_34 = arith.constant dense<0.000000e+00> : vector<16x512xf32>
    %57 = tpu.matmul %55, %56, %cst_34 {dimension_numbers = #tpu.dot_dimension_numbers<[1], [0], [0], [1], [0, 0, 1, 1], [], []>} : vector<16x256xbf16>, vector<256x512xbf16>, vector<16x512xf32> -> vector<16x512xf32>
    %58 = vector.extract_strided_slice %57 {offsets = [0, 0], sizes = [16, 256], strides = [1, 1]} : vector<16x512xf32> to vector<16x256xf32>
    %59 = vector.extract_strided_slice %57 {offsets = [0, 256], sizes = [16, 256], strides = [1, 1]} : vector<16x512xf32> to vector<16x256xf32>
    %60 = arith.truncf %58 : vector<16x256xf32> to vector<16x256xbf16>
    %cst_35 = arith.constant dense<0.000000e+00> : vector<16x256xf32>
    %61 = tpu.matmul %1, %60, %cst_35 {dimension_numbers = #tpu.dot_dimension_numbers<[1], [0], [0], [1], [0, 0, 1, 1], [], []>} : vector<16x16xbf16>, vector<16x256xbf16>, vector<16x256xf32> -> vector<16x256xf32>
    %62 = arith.addf %61, %59 : vector<16x256xf32>
    %c0_36 = arith.constant 0 : index
    %c0_37 = arith.constant 0 : index
    %63 = vector.load %arg12[%c0_36, %c0_37] : memref<1x256xf32, #tpu.memory_space<vmem>>, vector<1x256xf32>
    %64 = vector.broadcast %63 : vector<1x256xf32> to vector<16x256xf32>
    %65 = arith.addf %62, %64 : vector<16x256xf32>
    %cst_38 = arith.constant 0.000000e+00 : f32
    %66 = vector.broadcast %cst_38 : f32 to vector<16x256xf32>
    %67 = arith.maximumf %65, %66 : vector<16x256xf32>
    %c0_39 = arith.constant 0 : index
    %c0_40 = arith.constant 0 : index
    %68 = vector.load %arg13[%c0_39, %c0_40] : memref<2x256xf32, #tpu.memory_space<vmem>>, vector<2x256xf32>
    %c0_41 = arith.constant 0 : index
    %c0_42 = arith.constant 0 : index
    %69 = vector.load %arg14[%c0_41, %c0_42] : memref<1x2xf32, #tpu.memory_space<vmem>>, vector<1x2xf32>
    %70 = vector.extract_strided_slice %68 {offsets = [0, 0], sizes = [1, 256], strides = [1, 1]} : vector<2x256xf32> to vector<1x256xf32>
    %71 = vector.broadcast %70 : vector<1x256xf32> to vector<16x256xf32>
    %72 = arith.mulf %67, %71 : vector<16x256xf32>
    %cst_43 = arith.constant dense<0.000000e+00> : vector<16xf32>
    %73 = vector.multi_reduction <add>, %72, %cst_43 [1] : vector<16x256xf32> to vector<16xf32>
    %74 = vector.shape_cast %73 : vector<16xf32> to vector<16x1xf32>
    %75 = vector.extract_strided_slice %69 {offsets = [0, 0], sizes = [1, 1], strides = [1, 1]} : vector<1x2xf32> to vector<1x1xf32>
    %76 = vector.broadcast %75 : vector<1x1xf32> to vector<16x1xf32>
    %77 = arith.addf %74, %76 : vector<16x1xf32>
    %78 = vector.extract_strided_slice %68 {offsets = [1, 0], sizes = [1, 256], strides = [1, 1]} : vector<2x256xf32> to vector<1x256xf32>
    %79 = vector.broadcast %78 : vector<1x256xf32> to vector<16x256xf32>
    %80 = arith.mulf %67, %79 : vector<16x256xf32>
    %cst_44 = arith.constant dense<0.000000e+00> : vector<16xf32>
    %81 = vector.multi_reduction <add>, %80, %cst_44 [1] : vector<16x256xf32> to vector<16xf32>
    %82 = vector.shape_cast %81 : vector<16xf32> to vector<16x1xf32>
    %83 = vector.extract_strided_slice %69 {offsets = [0, 1], sizes = [1, 1], strides = [1, 1]} : vector<1x2xf32> to vector<1x1xf32>
    %84 = vector.broadcast %83 : vector<1x1xf32> to vector<16x1xf32>
    %85 = arith.addf %82, %84 : vector<16x1xf32>
    %86 = math.tanh %77 : vector<16x1xf32>
    %87 = arith.negf %85 : vector<16x1xf32>
    %88 = math.exp %87 : vector<16x1xf32>
    %cst_45 = arith.constant 1.000000e+00 : f32
    %89 = vector.broadcast %cst_45 : f32 to vector<16x1xf32>
    %90 = arith.addf %89, %88 : vector<16x1xf32>
    %91 = arith.divf %89, %90 : vector<16x1xf32>
    %92 = arith.mulf %86, %91 : vector<16x1xf32>
    %cst_46 = arith.constant dense<0xFF800000> : vector<1xf32>
    %93 = vector.multi_reduction <maximumf>, %92, %cst_46 [0] : vector<16x1xf32> to vector<1xf32>
    %94 = vector.shape_cast %93 : vector<1xf32> to vector<1x1xf32>
    %95 = vector.broadcast %94 : vector<1x1xf32> to vector<16x1xf32>
    %96 = arith.subf %92, %95 : vector<16x1xf32>
    %97 = math.exp %96 : vector<16x1xf32>
    %cst_47 = arith.constant dense<0.000000e+00> : vector<1xf32>
    %98 = vector.multi_reduction <add>, %97, %cst_47 [0] : vector<16x1xf32> to vector<1xf32>
    %99 = vector.shape_cast %98 : vector<1xf32> to vector<1x1xf32>
    %100 = vector.broadcast %99 : vector<1x1xf32> to vector<16x1xf32>
    %101 = arith.divf %97, %100 : vector<16x1xf32>
    %102 = vector.broadcast %101 : vector<16x1xf32> to vector<16x256xf32>
    %103 = arith.mulf %102, %67 : vector<16x256xf32>
    %cst_48 = arith.constant dense<0.000000e+00> : vector<256xf32>
    %104 = vector.multi_reduction <add>, %103, %cst_48 [0] : vector<16x256xf32> to vector<256xf32>
    %105 = vector.shape_cast %104 : vector<256xf32> to vector<1x256xf32>
    %c0_49 = arith.constant 0 : index
    %c0_50 = arith.constant 0 : index
    %c0_51 = arith.constant 0 : index
    %106 = vector.load %arg17[%c0_49, %c0_50, %c0_51] : memref<1x1x256xf32, #tpu.memory_space<vmem>>, vector<1x1x256xf32>
    %107 = vector.shape_cast %106 : vector<1x1x256xf32> to vector<1x256xf32>
    %108 = vector.shape_cast %105 : vector<1x256xf32> to vector<1x1x256xf32>
    tpu.vector_store %arg17[%c0_49, %c0_50, %c0_51], %108 {strides = array<i32>} : memref<1x1x256xf32, #tpu.memory_space<vmem>>, vector<1x1x256xf32>,
    %109 = arith.truncf %105 : vector<1x256xf32> to vector<1x256xbf16>
    %c0_52 = arith.constant 0 : index
    %c0_53 = arith.constant 0 : index
    %110 = vector.load %arg15[%c0_52, %c0_53] : memref<256x2xbf16, #tpu.memory_space<vmem>>, vector<256x2xbf16>
    %cst_54 = arith.constant dense<0.000000e+00> : vector<1x2xf32>
    %111 = tpu.matmul %109, %110, %cst_54 {dimension_numbers = #tpu.dot_dimension_numbers<[1], [0], [0], [1], [0, 0, 1, 1], [], []>} : vector<1x256xbf16>, vector<256x2xbf16>, vector<1x2xf32> -> vector<1x2xf32>
    %c0_55 = arith.constant 0 : index
    %c0_56 = arith.constant 0 : index
    %112 = vector.load %arg16[%c0_55, %c0_56] : memref<1x2xf32, #tpu.memory_space<vmem>>, vector<1x2xf32>
    %113 = arith.addf %111, %112 : vector<1x2xf32>
    %c0_57 = arith.constant 0 : index
    %c0_58 = arith.constant 0 : index
    %c0_59 = arith.constant 0 : index
    %114 = vector.load %arg18[%c0_57, %c0_58, %c0_59] : memref<1x1x2xf32, #tpu.memory_space<vmem>>, vector<1x1x2xf32>
    %115 = vector.shape_cast %114 : vector<1x1x2xf32> to vector<1x2xf32>
    %116 = vector.shape_cast %113 : vector<1x2xf32> to vector<1x1x2xf32>
    tpu.vector_store %arg18[%c0_57, %c0_58, %c0_59], %116 {strides = array<i32>} : memref<1x1x2xf32, #tpu.memory_space<vmem>>, vector<1x1x2xf32>,
    return
  }
  func.func @transform_0(%arg0: i32) -> (i32, i32, i32) {
    %c0_i32 = arith.constant 0 : i32
    %c0_i32_0 = arith.constant 0 : i32
    %c0_i32_1 = arith.constant 0 : i32
    return %arg0, %c0_i32, %c0_i32_0 : i32, i32, i32
  }
  func.func @transform_1(%arg0: i32) -> (i32, i32, i32) {
    %c0_i32 = arith.constant 0 : i32
    %c0_i32_0 = arith.constant 0 : i32
    %c0_i32_1 = arith.constant 0 : i32
    return %arg0, %c0_i32, %c0_i32_0 : i32, i32, i32
  }
  func.func @transform_2(%arg0: i32) -> (i32, i32) {
    %c0_i32 = arith.constant 0 : i32
    %c0_i32_0 = arith.constant 0 : i32
    %c0_i32_1 = arith.constant 0 : i32
    return %c0_i32, %c0_i32_0 : i32, i32
  }
  func.func @transform_3(%arg0: i32) -> (i32, i32) {
    %c0_i32 = arith.constant 0 : i32
    %c0_i32_0 = arith.constant 0 : i32
    %c0_i32_1 = arith.constant 0 : i32
    return %c0_i32, %c0_i32_0 : i32, i32
  }
  func.func @transform_4(%arg0: i32) -> (i32, i32) {
    %c0_i32 = arith.constant 0 : i32
    %c0_i32_0 = arith.constant 0 : i32
    %c0_i32_1 = arith.constant 0 : i32
    return %c0_i32, %c0_i32_0 : i32, i32
  }
  func.func @transform_5(%arg0: i32) -> (i32, i32) {
    %c0_i32 = arith.constant 0 : i32
    %c0_i32_0 = arith.constant 0 : i32
    %c0_i32_1 = arith.constant 0 : i32
    return %c0_i32, %c0_i32_0 : i32, i32
  }
  func.func @transform_6(%arg0: i32) -> (i32, i32) {
    %c0_i32 = arith.constant 0 : i32
    %c0_i32_0 = arith.constant 0 : i32
    %c0_i32_1 = arith.constant 0 : i32
    return %c0_i32, %c0_i32_0 : i32, i32
  }
  func.func @transform_7(%arg0: i32) -> (i32, i32) {
    %c0_i32 = arith.constant 0 : i32
    %c0_i32_0 = arith.constant 0 : i32
    %c0_i32_1 = arith.constant 0 : i32
    return %c0_i32, %c0_i32_0 : i32, i32
  }
  func.func @transform_8(%arg0: i32) -> (i32, i32) {
    %c0_i32 = arith.constant 0 : i32
    %c0_i32_0 = arith.constant 0 : i32
    %c0_i32_1 = arith.constant 0 : i32
    return %c0_i32, %c0_i32_0 : i32, i32
  }
  func.func @transform_9(%arg0: i32) -> (i32, i32) {
    %c0_i32 = arith.constant 0 : i32
    %c0_i32_0 = arith.constant 0 : i32
    %c0_i32_1 = arith.constant 0 : i32
    return %c0_i32, %c0_i32_0 : i32, i32
  }
  func.func @transform_10(%arg0: i32) -> (i32, i32) {
    %c0_i32 = arith.constant 0 : i32
    %c0_i32_0 = arith.constant 0 : i32
    %c0_i32_1 = arith.constant 0 : i32
    return %c0_i32, %c0_i32_0 : i32, i32
  }
  func.func @transform_11(%arg0: i32) -> (i32, i32) {
    %c0_i32 = arith.constant 0 : i32
    %c0_i32_0 = arith.constant 0 : i32
    %c0_i32_1 = arith.constant 0 : i32
    return %c0_i32, %c0_i32_0 : i32, i32
  }
  func.func @transform_12(%arg0: i32) -> (i32, i32) {
    %c0_i32 = arith.constant 0 : i32
    %c0_i32_0 = arith.constant 0 : i32
    %c0_i32_1 = arith.constant 0 : i32
    return %c0_i32, %c0_i32_0 : i32, i32
  }
  func.func @transform_13(%arg0: i32) -> (i32, i32) {
    %c0_i32 = arith.constant 0 : i32
    %c0_i32_0 = arith.constant 0 : i32
    %c0_i32_1 = arith.constant 0 : i32
    return %c0_i32, %c0_i32_0 : i32, i32
  }
  func.func @transform_14(%arg0: i32) -> (i32, i32) {
    %c0_i32 = arith.constant 0 : i32
    %c0_i32_0 = arith.constant 0 : i32
    %c0_i32_1 = arith.constant 0 : i32
    return %c0_i32, %c0_i32_0 : i32, i32
  }
  func.func @transform_15(%arg0: i32) -> (i32, i32) {
    %c0_i32 = arith.constant 0 : i32
    %c0_i32_0 = arith.constant 0 : i32
    %c0_i32_1 = arith.constant 0 : i32
    return %c0_i32, %c0_i32_0 : i32, i32
  }
  func.func @transform_16(%arg0: i32) -> (i32, i32, i32) {
    %c0_i32 = arith.constant 0 : i32
    %c0_i32_0 = arith.constant 0 : i32
    %c0_i32_1 = arith.constant 0 : i32
    return %arg0, %c0_i32, %c0_i32_0 : i32, i32, i32
  }
  func.func @transform_17(%arg0: i32) -> (i32, i32, i32) {
    %c0_i32 = arith.constant 0 : i32
    %c0_i32_0 = arith.constant 0 : i32
    %c0_i32_1 = arith.constant 0 : i32
    return %arg0, %c0_i32, %c0_i32_0 : i32, i32, i32
  }
}

</mosaic_0001>

<bundles_post_ra>
// kernel: tpu_custom_call.1
= control target key start
LH: loop header
LB: loop body
LE: loop exit
PB: predicated region body
PF: predicated region fallthrough
CT: control target
= control target key end

     0   :  { %s5343_s0 = inlined_call_operand.vmem [shape: bf16[4,16,16], index: 0, kind: input, shape index: {}]   ;;  %s5344_s1 = inlined_call_operand.vmem [shape: bf16[4,16,128], index: 1, kind: input, shape index: {}]   ;;  %s5345_s2 = inlined_call_operand.hbm [shape: bf16[128,512], index: 2, kind: input, shape index: {}]   ;;  %s5346_s3 = inlined_call_operand.vmem [shape: f32[1,256], index: 3, kind: input, shape index: {}]   ;;  %s5347_s4 = inlined_call_operand.hbm [shape: bf16[256,512], index: 4, kind: input, shape index: {}]   ;;  %s5348_s5 = inlined_call_operand.vmem [shape: f32[1,256], index: 5, kind: input, shape index: {}]   ;;  %s5349_s6 = inlined_call_operand.hbm [shape: bf16[256,512], index: 6, kind: input, shape index: {}]   ;;  %s5350_s7 = inlined_call_operand.vmem [shape: f32[1,256], index: 7, kind: input, shape index: {}]   ;;  %s5351_s8 = inlined_call_operand.hbm [shape: bf16[256,512], index: 8, kind: input, shape index: {}]   ;;  %s5352_s9 = inlined_call_operand.vmem [shape: f32[1,256], index: 9, kind: input, shape index: {}]   ;;  %s5353_s10 = inlined_call_operand.hbm [shape: bf16[256,512], index: 10, kind: input, shape index: {}]   ;;  %s5354_s11 = inlined_call_operand.vmem [shape: f32[1,256], index: 11, kind: input, shape index: {}]   ;;  %s5355_s12 = inlined_call_operand.vmem [shape: f32[2,256], index: 12, kind: input, shape index: {}]   ;;  %s5356_s13 = inlined_call_operand.vmem [shape: f32[1,2], index: 13, kind: input, shape index: {}]   ;;  %s5357_s14 = inlined_call_operand.vmem [shape: bf16[256,2], index: 14, kind: input, shape index: {}]   ;;  %s5358_s15 = inlined_call_operand.vmem [shape: f32[1,2], index: 15, kind: input, shape index: {}]   ;;  %s5359_s16 = inlined_call_operand.hbm [shape: f32[4,1,256], index: 16, kind: output, shape index: {0}]   ;;  %s5360_s17 = inlined_call_operand.vmem [shape: f32[4,1,2], index: 17, kind: output, shape index: {1}]  }
   0x1   :  { %5374 = sst [smem:[#allocation24_spill]] %s5343_s0 }
   0x2   :  { %5375 = sst [smem:[#allocation25_spill]] %s5344_s1 }
   0x3   :  { %5376 = sst [smem:[#allocation26_spill]] %s5347_s4 }
   0x4   :  { %5377 = sst [smem:[#allocation27_spill]] %s5358_s15 }
   0x5   :  { %5378 = sst [smem:[#allocation28_spill]] %s5359_s16 }
   0x6   :  { %5379 = sst [smem:[#allocation29_spill]] %s5360_s17 }
   0x7   :  { %23 = vsyncpa [#allocation3], 0 }
   0x8   :  { %24 = vsyncpa [#allocation6], 0 }
   0x9   :  { %25 = vsyncpa [#allocation9], 0 }
   0xa   :  { %26 = vsyncpa [#allocation4], 0 }
   0xb   :  { %28 = vsyncpa [#allocation4 + $0x1], 0  ;;  %s4932_s24 = smov 0   ;;  %s4934_s25 = smov 0  }
   0xc   :  { %s4936_s26 = smov 0   ;;  %s4938_s27 = smov 0  }
   0xd LB: > { %5380 = sst [smem:[#allocation16_spill]] %s4817_s24  ;;  %s4953_s28 = sadd.s32 4294967295, %s4829_s27   ;;  %s4829_s27 = sphi %s4938_s27, %s5413_s27   ;;  %s4825_s26 = sphi %s4936_s26, %s5416_s26   ;;  %s4821_s25 = sphi %s4934_s25, %s5415_s25   ;;  %s4817_s24 = sphi %s4932_s24, %s5414_s24  }
   0xe   : > { %5381 = sst [smem:[#allocation17_spill]] %s4821_s25  ;;  %s3666_s29 = sadd.s32 4294967294, %s4829_s27  }
   0xf   : > { %5382 = sst [smem:[#allocation18_spill]] %s4825_s26  ;;  %s4957_s0 = sadd.s32 1, %s4829_s27  }
  0x10   : > { %5383 = sst [smem:[#allocation19_spill]] %s4829_s27  ;;  %s387_s30 = sadd.s32 1, %s4825_s26 }
  0x11   : > { %5384 = sst [smem:[#allocation20_spill]] %s4957_s0  ;;  %s384_s18 = ssub.s32 %s4829_s27, %s4957_s0 }
  0x12   : > { %p397_p0 = scmp.ne.s32.totalorder %s4825_s26, %s4821_s25  ;;  %p385_p1 = scmp.eq.s32.totalorder %s384_s18, 0 }
  0x13   : > { %p398_p2 = scmp.eq.s32.totalorder %s4953_s28, 3  ;;  %p403_p3 = scmp.ne.s32.totalorder %s4821_s25, %s4817_s24 }
  0x14   : > { %p404_p4 = scmp.eq.s32.totalorder %s3666_s29, 3  ;;  %p3667_p7 = scmp.ge.s32.totalorder %s4829_s27, 1 }
  0x15   : > { %s4968_s19 = scalar_select %p385_p1, %s4825_s26, %s387_s30  }
  0x16   : > { %p4970_p5 = por %p398_p2, %p397_p0  ;;  %p4974_p6 = por %p404_p4, %p403_p3 }
  0x17   : > { %5385 = sst [smem:[#allocation21_spill]] %s4968_s19  ;;  %p437_p8 = scmp.lt.s32.totalorder %s4829_s27, 5 }
  0x18   : > { %s5386_s1 = scalar_select %p4970_p5, 1, 0 }
  0x19   : > { %s5388_s20 = scalar_select %p4974_p6, 1, 0 }
  0x1a   : > { %5387 = sst [smem:[#allocation22_spill]] %s5386_s1  ;;  %p5367_p9 = scmp.eq.s32.totalorder %s4953_s28, 0 }
  0x1b   : > { %5389 = sst [smem:[#allocation23_spill]] %s5388_s20  ;;  %p4981_p10 = pnand %p3667_p7, %p437_p8 }
  0x1c   : > { %s4831_s22 = smov [#allocation5]   ;;  %s4832_s30 = smov [#allocation8]  }
  0x1d   : > { %s5390_s21 = scalar_select %p4981_p10, 1, 0 }
  0x1e   : > { %p4071_p11 = pneg %p4981_p10  ;;  %s465_s23 = sshll.u32 %s4831_s22, 4  ;;  %s4987_s23 = int_to_ptr.vmem [resolvable:$true] %s465_s23 }
  0x1f   : > { %s497_s18 = sshll.u32 %s4832_s30, 4  ;;  %s4833_s19 = smov [#allocation2]   ;;  %s4995_s18 = int_to_ptr.vmem [resolvable:$true] %s497_s18 }
  0x20   : > { %p4991_p12 = pnand %p5367_p9, %p4071_p11  ;;  %s4997_s26 = sshll.u32 %s4833_s19, 4  ;;  %s450_s26 = int_to_ptr.vmem [resolvable:$true] %s4997_s26 }
  0x21   : > { %s5392_s4 = sld [smem:[#allocation26_spill]] }
  0x22   : > { %p5007_p0 = pneg %p4991_p12 }
  0x27   : > { %s4615_s24 = scalar_lea.hbm %s5392_s4, 8192 }
  0x28   : > { %p4616_p13 = scmp.ne.s32.totalorder %s5392_s4, %s4615_s24  ;;  %p4622_p3 = scmp.lt.u32.totalorder %s4615_s24, %s5392_s4 }
  0x2a   : > { %p4618_p1 = pnand %p5007_p0, %p4616_p13 }
  0x2c   : > { %p4619_p2 = pneg %p4618_p1 }
  0x2e   : > { %p4624_p4 = pnand %p4622_p3, %p4619_p2 }
  0x30   : > { %4627 = shalt.err (!%p4624_p4)
}
  0x31   : > { %s4628_s27 = scalar_lea.vmem %s4987_s23, 8192  ;;  %p4636_p9 = scmp.lt.s32.totalorder %s4987_s23, %s4987_s23 }
  0x32   : > { %p4629_p7 = scmp.ne.s32.totalorder %s4987_s23, %s4628_s27  ;;  %p4637_p6 = scmp.lt.s32.totalorder %s4628_s27, %s4628_s27 }
  0x34   : > { %p4631_p8 = pnand %p4629_p7, %p5007_p0  ;;  %p4638_p13 = por %p4637_p6, %p4636_p9 }
  0x36   : > { %p4632_p11 = pneg %p4631_p8 }
  0x38   : > { %p4639_p1 = pnand %p4638_p13, %p4632_p11 }
  0x3a   : > { %4642 = shalt.err (!%p4639_p1)
}
  0x3b   : > { %s4834_s0 = smov 256   ;;  %s4835_s24 = smov 16  }
  0x3c   : > { %4077 = dma.hbm_to_vmem [thread:$0]  (!%p4991_p12), %s5392_s4, 8192, %s4987_s23, [#allocation6], %s4834_s0, %s4834_s0, %s4835_s24  }
  0x3d   : > { %s4643_s27 = scalar_lea.hbm %s5351_s8, 8192 }
  0x3e   : > { %p4644_p6 = scmp.ne.s32.totalorder %s5351_s8, %s4643_s27  ;;  %p4650_p3 = scmp.lt.u32.totalorder %s4643_s27, %s5351_s8 }
  0x40   : > { %p4646_p9 = pnand %p4644_p6, %p5007_p0 }
  0x42   : > { %p4647_p2 = pneg %p4646_p9 }
  0x44   : > { %p4652_p4 = pnand %p4650_p3, %p4647_p2 }
  0x46   : > { %4655 = shalt.err (!%p4652_p4)
}
  0x47   : > { %s4656_s23 = scalar_lea.vmem %s4995_s18, 8192  ;;  %p4664_p13 = scmp.lt.s32.totalorder %s4995_s18, %s4995_s18 }
  0x48   : > { %p4657_p7 = scmp.ne.s32.totalorder %s4995_s18, %s4656_s23  ;;  %p4665_p1 = scmp.lt.s32.totalorder %s4656_s23, %s4656_s23 }
  0x4a   : > { %p4659_p8 = pnand %p4657_p7, %p5007_p0  ;;  %p4666_p6 = por %p4665_p1, %p4664_p13 }
  0x4c   : > { %p4660_p11 = pneg %p4659_p8 }
  0x4e   : > { %p4667_p9 = pnand %p4666_p6, %p4660_p11 }
  0x50   : > { %4670 = shalt.err (!%p4667_p9)
}
  0x51   : > { %4083 = dma.hbm_to_vmem [thread:$0]  (!%p4991_p12), %s5351_s8, 8192, %s4995_s18, [#allocation9], %s4834_s0, %s4834_s0, %s4835_s24  }
  0x52   : > { %s4671_s20 = scalar_lea.hbm %s5345_s2, 4096 }
  0x53   : > { %p4672_p2 = scmp.ne.s32.totalorder %s5345_s2, %s4671_s20  ;;  %p4678_p7 = scmp.lt.u32.totalorder %s4671_s20, %s5345_s2 }
  0x55   : > { %p4674_p3 = pnand %p4672_p2, %p5007_p0 }
  0x57   : > { %p4675_p4 = pneg %p4674_p3 }
  0x59   : > { %p4680_p8 = pnand %p4678_p7, %p4675_p4 }
  0x5b   : > { %4683 = shalt.err (!%p4680_p8)
}
  0x5c   : > { %s4684_s23 = scalar_lea.vmem %s450_s26, 4096  ;;  %p4692_p6 = scmp.lt.s32.totalorder %s450_s26, %s450_s26 }
  0x5d   : > { %p4685_p11 = scmp.ne.s32.totalorder %s450_s26, %s4684_s23  ;;  %p4693_p9 = scmp.lt.s32.totalorder %s4684_s23, %s4684_s23 }
  0x5f   : > { %p4687_p13 = pnand %p4685_p11, %p5007_p0  ;;  %p4694_p5 = por %p4693_p9, %p4692_p6 }
  0x61   : > { %p4688_p1 = pneg %p4687_p13 }
  0x63   : > { %p4695_p10 = pnand %p4694_p5, %p4688_p1 }
  0x65   : > { %4698 = shalt.err (!%p4695_p10)
}
  0x66   : > { %4074 = dma.hbm_to_vmem [thread:$0]  (!%p4991_p12), %s5345_s2, 4096, %s450_s26, [#allocation3], %s4834_s0, %s4834_s0, %s4835_s24  }
  0x67   : > { %s4836_s16 = smov [#allocation7]   ;;  %s4837_s1 = smov [#allocation10]  }
  0x68   : > { %s481_s25 = sshll.u32 %s4836_s16, 4  ;;  %s513_s20 = sshll.u32 %s4837_s1, 4  ;;  %s482_s25 = int_to_ptr.vmem [resolvable:$true] %s481_s25  ;;  %s514_s20 = int_to_ptr.vmem [resolvable:$true] %s513_s20 }
  0x69   : > { %s4699_s19 = scalar_lea.hbm %s5349_s6, 8192 }
  0x6a   : > { %p4700_p5 = scmp.ne.s32.totalorder %s5349_s6, %s4699_s19  ;;  %p4706_p3 = scmp.lt.u32.totalorder %s4699_s19, %s5349_s6 }
  0x6c   : > { %p4702_p10 = pnand %p4700_p5, %p5007_p0 }
  0x6e   : > { %p4703_p2 = pneg %p4702_p10 }
  0x70   : > { %p4708_p4 = pnand %p4706_p3, %p4703_p2 }
  0x72   : > { %4711 = shalt.err (!%p4708_p4)
}
  0x73   : > { %s4712_s26 = scalar_lea.vmem %s482_s25, 8192  ;;  %p4720_p13 = scmp.lt.s32.totalorder %s482_s25, %s482_s25 }
  0x74   : > { %p4713_p7 = scmp.ne.s32.totalorder %s482_s25, %s4712_s26  ;;  %p4721_p1 = scmp.lt.s32.totalorder %s4712_s26, %s4712_s26 }
  0x76   : > { %p4715_p8 = pnand %p4713_p7, %p5007_p0  ;;  %p4722_p6 = por %p4721_p1, %p4720_p13 }
  0x78   : > { %p4716_p11 = pneg %p4715_p8 }
  0x7a   : > { %p4723_p9 = pnand %p4722_p6, %p4716_p11 }
  0x7c   : > { %4726 = shalt.err (!%p4723_p9)
}
  0x7d   : > { %4080 = dma.hbm_to_vmem [thread:$0]  (!%p4991_p12), %s5349_s6, 8192, %s482_s25, [#allocation6], %s4834_s0, %s4834_s0, %s4835_s24  }
  0x7e   : > { %s4727_s22 = scalar_lea.hbm %s5353_s10, 8192 }
  0x7f   : > { %p4728_p5 = scmp.ne.s32.totalorder %s5353_s10, %s4727_s22  ;;  %p4734_p3 = scmp.lt.u32.totalorder %s4727_s22, %s5353_s10 }
  0x81   : > { %p4730_p10 = pnand %p4728_p5, %p5007_p0 }
  0x83   : > { %p4731_p2 = pneg %p4730_p10 }
  0x85   : > { %p4736_p4 = pnand %p4734_p3, %p4731_p2 }
  0x87   : > { %4739 = shalt.err (!%p4736_p4)
}
  0x88   : > { %s4740_s18 = scalar_lea.vmem %s514_s20, 8192  ;;  %p4748_p13 = scmp.lt.s32.totalorder %s514_s20, %s514_s20 }
  0x89   : > { %p4741_p7 = scmp.ne.s32.totalorder %s514_s20, %s4740_s18  ;;  %p4749_p1 = scmp.lt.s32.totalorder %s4740_s18, %s4740_s18 }
  0x8b   : > { %p4743_p8 = pnand %p4741_p7, %p5007_p0  ;;  %p4750_p6 = por %p4749_p1, %p4748_p13 }
  0x8d   : > { %p4744_p11 = pneg %p4743_p8 }
  0x8f   : > { %p4751_p9 = pnand %p4750_p6, %p4744_p11 }
  0x91   : > { %4754 = shalt.err (!%p4751_p9)
}
  0x92   : > { %4086 = dma.hbm_to_vmem [thread:$0]  (!%p4991_p12), %s5353_s10, 8192, %s514_s20, [#allocation9], %s4834_s0, %s4834_s0, %s4835_s24  }
  0x93   : > { %p5394_p5 = scmp.ne.s32.totalorder %s5390_s21, 0 }
  0x94   : > { %p5395_p0 = scmp.eq.s32.totalorder (!%p5394_p5), %s4953_s28, 0 }
  0x95   : > { %560 = sbr.rel (%p5394_p5) target bundleno = 3131 (0xc3b), region = 84 }
  0x9c   : > { %4800 = dma.done.wait (%p5395_p0), [#allocation3], 4096   ;;  %p5396_p10 = pmov %p5395_p0 }
  0x9d   : > { %p5397_p2 = pmov %p5395_p0 }
  0x9e   : > { %4802 = vsyncadd (%p5396_p10), [#allocation3], 4294963200 }
  0x9f   : > { %4804 = dma.done.wait (%p5397_p2), [#allocation6], 16384   ;;  %p5398_p3 = pmov %p5395_p0 }
  0xa0   : > { %p5399_p4 = pmov %p5395_p0 }
  0xa1   : > { %4806 = vsyncadd (%p5398_p3), [#allocation6], 4294950912 }
  0xa2   : > { %4808 = dma.done.wait (%p5399_p4), [#allocation9], 16384   ;;  %p5400_p12 = pmov %p5395_p0 }
  0xa3   : > { %v4838_v0 = vmov 0   ;;  %p636_p7 = scmp.lt.s32.totalorder %s4953_s28, 3  ;;  %v4146_v1 = vld [vmem:[#allocation2 + $0x4] ss:$16 sps:$4 sm:$0xff]   ;;  %v4148_v2 = vld [vmem:[#allocation2] ss:$16 sps:$4 sm:$0xff]  }
  0xa4   : > { %4810 = vsyncadd (%p5400_p12), [#allocation9], 4294950912  ;;  %884 = vmatprep.mubr.bf16.mxu0 %v4838_v0  ;;  %927 = vmatprep.mubr.bf16.mxu1 %v4838_v0  ;;  %v4149_v3 = vld [vmem:[#allocation2 + $0x24] ss:$16 sps:$4 sm:$0xff]   ;;  %v4151_v4 = vld [vmem:[#allocation2 + $0x20] ss:$16 sps:$4 sm:$0xff]  }
  0xa5   : > { %4144 = vset.pattern.permute.xlu1 %v4838_v0  ;;  %4145 = vset.pattern.permute.xlu0 %v4838_v0  ;;  %s5141_s17 = scalar_select %p636_p7, %s4953_s28, 3  ;;  %v4152_v5 = vld [vmem:[#allocation2 + $0x44] ss:$16 sps:$4 sm:$0xff]   ;;  %v4154_v6 = vld [vmem:[#allocation2 + $0x40] ss:$16 sps:$4 sm:$0xff]   ;;  %vm945_vm0 = vcmask 130048  }
  0xa6   : > { %852 = vmatprep.subr.bf16.mxu0 %v4146_v1  ;;  %v4155_v7 = vld [vmem:[#allocation2 + $0x64] ss:$16 sps:$4 sm:$0xff]   ;;  %s5401_s24 = sld [smem:[#allocation24_spill]]  ;;  %v4157_v8 = vld [vmem:[#allocation2 + $0x60] ss:$16 sps:$4 sm:$0xff]   ;;  %s5402_s16 = sld [smem:[#allocation25_spill]] }
  0xa7   : > { %853 = vmatpush1.bf16.msra.mxu0 %v4148_v2  ;;  %s4004_s21 = sshll.u32 %s5141_s17, 3  ;;  %v4158_v9 = vld [vmem:[#allocation2 + $0x84] ss:$16 sps:$4 sm:$0xff]   ;;  %v4172_v10 = vld [vmem:[#allocation2 + $0xc] ss:$16 sps:$4 sm:$0xff]   ;;  %s4839_s15 = smov 127  }
  0xa8   : > { %854 = vmatprep.subr.bf16.mxu0 %v4149_v3  ;;  %v4174_v11 = vld [vmem:[#allocation2 + $0x8] ss:$16 sps:$4 sm:$0xff]   ;;  %v4175_v12 = vld [vmem:[#allocation2 + $0x2c] ss:$16 sps:$4 sm:$0xff]   ;;  %v4160_v13 = vld [vmem:[#allocation2 + $0x80] ss:$16 sps:$4 sm:$0xff]   ;;  %895 = vmatprep.subr.bf16.mxu1 %v4172_v10 }
  0xa9   : > { %v4161_v14 = vld [vmem:[#allocation2 + $0xa4] ss:$16 sps:$4 sm:$0xff]   ;;  %896 = vmatpush1.bf16.msra.mxu1 %v4174_v11  ;;  %v4177_v15 = vld [vmem:[#allocation2 + $0x28] ss:$16 sps:$4 sm:$0xff]   ;;  %v4178_v16 = vld [vmem:[#allocation2 + $0x4c] ss:$16 sps:$4 sm:$0xff]  }
  0xaa   : > { %897 = vmatprep.subr.bf16.mxu1 %v4175_v12  ;;  %v4163_v17 = vld [vmem:[#allocation2 + $0xa0] ss:$16 sps:$4 sm:$0xff]   ;;  %v4164_v18 = vld [vmem:[#allocation2 + $0xc4] ss:$16 sps:$4 sm:$0xff]   ;;  %v4180_v19 = vld [vmem:[#allocation2 + $0x48] ss:$16 sps:$4 sm:$0xff]  }
  0xab   : > { %855 = vmatpush1.bf16.msra.mxu0 %v4151_v4  ;;  %v4166_v20 = vld [vmem:[#allocation2 + $0xc0] ss:$16 sps:$4 sm:$0xff]   ;;  %v4181_v21 = vld [vmem:[#allocation2 + $0x6c] ss:$16 sps:$4 sm:$0xff]   ;;  %v4167_v22 = vld [vmem:[#allocation2 + $0xe4] ss:$16 sps:$4 sm:$0xff]  }
  0xac   : > { %856 = vmatprep.subr.bf16.mxu0 %v4152_v5  ;;  %s5147_s20 = scalar_lea.vmem %s5401_s24, %s4004_s21  ;;  %s5152_s1 = scalar_lea.vmem %s5402_s16, %s4004_s21  ;;  %v4183_v23 = vld [vmem:[#allocation2 + $0x68] ss:$16 sps:$4 sm:$0xff]   ;;  %v4184_v24 = vld [vmem:[#allocation2 + $0x8c] ss:$16 sps:$4 sm:$0xff]   ;;  %v4169_v25 = vld [vmem:[#allocation2 + $0xe0] ss:$16 sps:$4 sm:$0xff]  }
  0xad   : > { %898 = vmatpush1.bf16.msra.mxu1 %v4177_v15  ;;  %v4186_v26 = vld [vmem:[#allocation2 + $0x88] ss:$16 sps:$4 sm:$0xff]   ;;  %v4187_v27 = vld [vmem:[#allocation2 + $0xac] ss:$16 sps:$4 sm:$0xff]   ;;  %v4170_v28 = vld [vmem:[%s5152_s1] sm:$0xff]   ;;  %vm3253_vm1 = vcmask 7168  }
  0xae   : > { %899 = vmatprep.subr.bf16.mxu1 %v4178_v16  ;;  %v4189_v29 = vld [vmem:[#allocation2 + $0xa8] ss:$16 sps:$4 sm:$0xff]   ;;  %v4190_v30 = vld [vmem:[#allocation2 + $0xcc] ss:$16 sps:$4 sm:$0xff]   ;;  %v4196_v34 = vld [vmem:[#allocation5] ss:$16 sps:$4 sm:$0xff]  }
  0xaf   : > { %857 = vmatpush1.bf16.msra.mxu0 %v4154_v6  ;;  %v4192_v31 = vld [vmem:[#allocation2 + $0xc8] ss:$16 sps:$4 sm:$0xff]   ;;  %v4193_v32 = vld [vmem:[#allocation2 + $0xec] ss:$16 sps:$4 sm:$0xff]   ;;  %v4198_v35 = vld [vmem:[#allocation5 + $0x4] ss:$16 sps:$4 sm:$0xff]  }
  0xb0   : > { %858 = vmatprep.subr.bf16.mxu0 %v4155_v7  ;;  %v4195_v33 = vld [vmem:[#allocation2 + $0xe8] ss:$16 sps:$4 sm:$0xff]   ;;  %v4204_v36 = vld [vmem:[#allocation5 + $0x24] ss:$16 sps:$4 sm:$0xff]   ;;  %v4202_v37 = vld [vmem:[#allocation5 + $0x20] ss:$16 sps:$4 sm:$0xff]  }
  0xb1   : > { %900 = vmatpush1.bf16.msra.mxu1 %v4180_v19  ;;  %v4210_v38 = vld [vmem:[#allocation5 + $0x44] ss:$16 sps:$4 sm:$0xff]   ;;  %v4208_v39 = vld [vmem:[#allocation5 + $0x40] ss:$16 sps:$4 sm:$0xff]   ;;  %v4201_v5 = vld [vmem:[#allocation5 + $0xc] ss:$16 sps:$4 sm:$0xff]  }
  0xb2   : > { %901 = vmatprep.subr.bf16.mxu1 %v4181_v21  ;;  %v4216_v40 = vld [vmem:[#allocation5 + $0x64] ss:$16 sps:$4 sm:$0xff]   ;;  %v4214_v41 = vld [vmem:[#allocation5 + $0x60] ss:$16 sps:$4 sm:$0xff]   ;;  %v4199_v7 = vld [vmem:[#allocation5 + $0x8] ss:$16 sps:$4 sm:$0xff]  }
  0xb3   : > { %859 = vmatpush1.bf16.msra.mxu0 %v4157_v8  ;;  %v4222_v42 = vld [vmem:[#allocation5 + $0x84] ss:$16 sps:$4 sm:$0xff]   ;;  %v4220_v43 = vld [vmem:[#allocation5 + $0x80] ss:$16 sps:$4 sm:$0xff]   ;;  %v4207_v8 = vld [vmem:[#allocation5 + $0x2c] ss:$16 sps:$4 sm:$0xff]  }
  0xb4   : > { %860 = vmatprep.subr.bf16.mxu0 %v4158_v9  ;;  %v4228_v44 = vld [vmem:[#allocation5 + $0xa4] ss:$16 sps:$4 sm:$0xff]   ;;  %v4226_v45 = vld [vmem:[#allocation5 + $0xa0] ss:$16 sps:$4 sm:$0xff]   ;;  %v4205_v9 = vld [vmem:[#allocation5 + $0x28] ss:$16 sps:$4 sm:$0xff]  }
  0xb5   : > { %902 = vmatpush1.bf16.msra.mxu1 %v4183_v23  ;;  %v4234_v46 = vld [vmem:[#allocation5 + $0xc4] ss:$16 sps:$4 sm:$0xff]   ;;  %v4232_v47 = vld [vmem:[#allocation5 + $0xc0] ss:$16 sps:$4 sm:$0xff]   ;;  %v4213_v10 = vld [vmem:[#allocation5 + $0x4c] ss:$16 sps:$4 sm:$0xff]  }
  0xb6   : > { %903 = vmatprep.subr.bf16.mxu1 %v4184_v24  ;;  %v4240_v48 = vld [vmem:[#allocation5 + $0xe4] ss:$16 sps:$4 sm:$0xff]   ;;  %v4238_v49 = vld [vmem:[#allocation5 + $0xe0] ss:$16 sps:$4 sm:$0xff]   ;;  %v4211_v11 = vld [vmem:[#allocation5 + $0x48] ss:$16 sps:$4 sm:$0xff]  }
  0xb7   : > { %861 = vmatpush1.bf16.msra.mxu0 %v4160_v13  ;;  %v4246_v50 = vld [vmem:[#allocation5 + $0x104] ss:$16 sps:$4 sm:$0xff]   ;;  %v4244_v51 = vld [vmem:[#allocation5 + $0x100] ss:$16 sps:$4 sm:$0xff]   ;;  %v4219_v12 = vld [vmem:[#allocation5 + $0x6c] ss:$16 sps:$4 sm:$0xff]  }
  0xb8   : > { %862 = vmatprep.subr.bf16.mxu0 %v4161_v14  ;;  %v4252_v52 = vld [vmem:[#allocation5 + $0x124] ss:$16 sps:$4 sm:$0xff]   ;;  %v4250_v53 = vld [vmem:[#allocation5 + $0x120] ss:$16 sps:$4 sm:$0xff]   ;;  %v4217_v13 = vld [vmem:[#allocation5 + $0x68] ss:$16 sps:$4 sm:$0xff]  }
  0xb9   : > { %904 = vmatpush1.bf16.msra.mxu1 %v4186_v26  ;;  %v4258_v54 = vld [vmem:[#allocation5 + $0x144] ss:$16 sps:$4 sm:$0xff]   ;;  %v4256_v55 = vld [vmem:[#allocation5 + $0x140] ss:$16 sps:$4 sm:$0xff]   ;;  %v4225_v14 = vld [vmem:[#allocation5 + $0x8c] ss:$16 sps:$4 sm:$0xff]  }
  0xba   : > { %905 = vmatprep.subr.bf16.mxu1 %v4187_v27  ;;  %v4264_v56 = vld [vmem:[#allocation5 + $0x164] ss:$16 sps:$4 sm:$0xff]   ;;  %v4262_v57 = vld [vmem:[#allocation5 + $0x160] ss:$16 sps:$4 sm:$0xff]   ;;  %v4223_v15 = vld [vmem:[#allocation5 + $0x88] ss:$16 sps:$4 sm:$0xff]  }
  0xbb   : > { %863 = vmatpush1.bf16.msra.mxu0 %v4163_v17  ;;  %v4270_v58 = vld [vmem:[#allocation5 + $0x184] ss:$16 sps:$4 sm:$0xff]   ;;  %v4268_v59 = vld [vmem:[#allocation5 + $0x180] ss:$16 sps:$4 sm:$0xff]   ;;  %v4231_v16 = vld [vmem:[#allocation5 + $0xac] ss:$16 sps:$4 sm:$0xff]  }
  0xbc   : > { %864 = vmatprep.subr.bf16.mxu0 %v4164_v18  ;;  %v4276_v60 = vld [vmem:[#allocation5 + $0x1a4] ss:$16 sps:$4 sm:$0xff]   ;;  %v4274_v61 = vld [vmem:[#allocation5 + $0x1a0] ss:$16 sps:$4 sm:$0xff]   ;;  %v4229_v17 = vld [vmem:[#allocation5 + $0xa8] ss:$16 sps:$4 sm:$0xff]  }
  0xbd   : > { %906 = vmatpush1.bf16.msra.mxu1 %v4189_v29  ;;  %v5157_v6 = vld [vmem:[%s5147_s20] sm:$0xff]   ;;  %v4237_v18 = vld [vmem:[#allocation5 + $0xcc] ss:$16 sps:$4 sm:$0xff]   ;;  %v4235_v19 = vld [vmem:[#allocation5 + $0xc8] ss:$16 sps:$4 sm:$0xff]   ;;  %s5403_s4 = sld [smem:[#allocation17_spill]] }
  0xbe   : > { %907 = vmatprep.subr.bf16.mxu1 %v4190_v30  ;;  %v4241_v21 = vld [vmem:[#allocation5 + $0xe8] ss:$16 sps:$4 sm:$0xff]   ;;  %v4255_v24 = vld [vmem:[#allocation5 + $0x12c] ss:$16 sps:$4 sm:$0xff]   ;;  %s5404_s16 = sld [smem:[#allocation22_spill]]  ;;  %s4006_s30 = sshll.u32 %s4953_s28, 5 }
  0xbf   : > { %865 = vmatpush1.bf16.msra.mxu0 %v4166_v20  ;;  %v4243_v20 = vld [vmem:[#allocation5 + $0xec] ss:$16 sps:$4 sm:$0xff]   ;;  %v4247_v23 = vld [vmem:[#allocation5 + $0x108] ss:$16 sps:$4 sm:$0xff]   ;;  %s5405_s18 = sld [smem:[#allocation28_spill]]  ;;  %s4841_s29 = smov [#allocation11]  }
  0xc0   : > { %866 = vmatprep.subr.bf16.mxu0 %v4167_v22  ;;  %v4249_v22 = vld [vmem:[#allocation5 + $0x10c] ss:$16 sps:$4 sm:$0xff]   ;;  %v4259_v27 = vld [vmem:[#allocation5 + $0x148] ss:$16 sps:$4 sm:$0xff]   ;;  %s4759_s0 = sshll.u32 %s4841_s29, 4  ;;  %s4760_s0 = int_to_ptr.vmem [resolvable:$false] %s4759_s0 }
  0xc1   : > { %908 = vmatpush1.bf16.msra.mxu1 %v4192_v31  ;;  %v4261_v26 = vld [vmem:[#allocation5 + $0x14c] ss:$16 sps:$4 sm:$0xff]   ;;  %v4265_v29 = vld [vmem:[#allocation5 + $0x168] ss:$16 sps:$4 sm:$0xff]   ;;  %s4761_s24 = scalar_lea.vmem %s4760_s0, 64 }
  0xc2   : > { %909 = vmatprep.subr.bf16.mxu1 %v4193_v32  ;;  %v4273_v30 = vld [vmem:[#allocation5 + $0x18c] ss:$16 sps:$4 sm:$0xff]   ;;  %v4271_v31 = vld [vmem:[#allocation5 + $0x188] ss:$16 sps:$4 sm:$0xff]  }
  0xc3   : > { %867 = vmatpush1.bf16.msra.mxu0 %v4169_v25  ;;  %v4253_v25 = vld [vmem:[#allocation5 + $0x128] ss:$16 sps:$4 sm:$0xff]   ;;  %v4279_v32 = vld [vmem:[#allocation5 + $0x1ac] ss:$16 sps:$4 sm:$0xff]  }
  0xc4   : > { %1398 = vmatprep.subr.bf16.mxu0 %v4198_v35  ;;  %v4285_v35 = vld [vmem:[#allocation5 + $0x1cc] ss:$16 sps:$4 sm:$0xff]   ;;  %p5406_p11 = scmp.ne.s32.totalorder %s5404_s16, 0 }
  0xc5   : > { %910 = vmatpush1.bf16.msra.mxu1 %v4195_v33  ;;  %v4277_v33 = vld [vmem:[#allocation5 + $0x1a8] ss:$16 sps:$4 sm:$0xff]   ;;  %s5300_s25 = scalar_lea.hbm %s5405_s18, %s4006_s30 }
  0xc6   : > { %885 = vmatmul.mubr.bf16.vlgmr.msra.gmra.mrb[0].mxu0 %v4170_v28 }
  0xc7   : > { %1399 = vmatpush1.bf16.msra.mxu0 %v4196_v34  ;;  %v4282_v34 = vld [vmem:[#allocation5 + $0x1c4] ss:$16 sps:$4 sm:$0xff]  }
  0xc8   : > { %928 = vmatmul.mubr.bf16.vlgmr.msra.gmra.mrb[0].mxu1 %v4170_v28  ;;  %1400 = vmatprep.subr.bf16.mxu0 %v4204_v36  ;;  %v4267_v28 = vld [vmem:[#allocation5 + $0x16c] ss:$16 sps:$4 sm:$0xff]   ;;  %v4280_v36 = vld [vmem:[#allocation5 + $0x1c0] ss:$16 sps:$4 sm:$0xff]  }
  0xc9   : > { %981 = vmatprep.mubr.bf16.mxu1 %v4838_v0 }
  0xcb   : > { %1401 = vmatpush1.bf16.msra.mxu0 %v4202_v37  ;;  %v4283_v37 = vld [vmem:[#allocation5 + $0x1c8] ss:$16 sps:$4 sm:$0xff]  }
  0xcc   : > { %1402 = vmatprep.subr.bf16.mxu0 %v4210_v38  ;;  %v4288_v38 = vld [vmem:[#allocation5 + $0x1e4] ss:$16 sps:$4 sm:$0xff]  }
  0xcf   : > { %1403 = vmatpush1.bf16.msra.mxu0 %v4208_v39  ;;  %v4291_v39 = vld [vmem:[#allocation5 + $0x1ec] ss:$16 sps:$4 sm:$0xff]  }
  0xd0   : > { %1404 = vmatprep.subr.bf16.mxu0 %v4216_v40  ;;  %v4286_v40 = vld [vmem:[#allocation5 + $0x1e0] ss:$16 sps:$4 sm:$0xff]  }
  0xd3   : > { %1405 = vmatpush1.bf16.msra.mxu0 %v4214_v41  ;;  %v4289_v41 = vld [vmem:[#allocation5 + $0x1e8] ss:$16 sps:$4 sm:$0xff]  }
  0xd4   : > { %1406 = vmatprep.subr.bf16.mxu0 %v4222_v42  ;;  %v994_v42 = vlaneseq }
  0xd6   : > { %vm3329_vm2 = vcmp.lt.s32.totalorder %v994_v42, 256 }
  0xd7   : > { %1407 = vmatpush1.bf16.msra.mxu0 %v4220_v43  ;;  %v5162_v43 = vshrl.u32 %v994_v42, 7 }
  0xd8   : > { %1408 = vmatprep.subr.bf16.mxu0 %v4228_v44 }
  0xd9   : > { %v5165_v44 = vsub.s32 0, %v5162_v43 }
  0xdb   : > { %1409 = vmatpush1.bf16.msra.mxu0 %v4226_v45  ;;  %v992_v45 = vld [vmem:[%s5346_s3] sm:$0x3] }
  0xdc   : > { %1410 = vmatprep.subr.bf16.mxu0 %v4234_v46  ;;  %v5171_v46 = vsub.s32 1, %v5162_v43 }
  0xdf   : > { %1411 = vmatpush1.bf16.msra.mxu0 %v4232_v47  ;;  %v997_v47 = vrot.slane %v992_v45, %v5165_v44 }
  0xe0   : > { %1412 = vmatprep.subr.bf16.mxu0 %v4240_v48  ;;  %v1001_v48 = vrot.slane %v992_v45, %v5171_v46  ;;  %v4313_v45 = vld [vmem:[#allocation7 + $0x68] ss:$16 sps:$4 sm:$0xff]  }
  0xe3   : > { %1413 = vmatpush1.bf16.msra.mxu0 %v4238_v49 }
  0xe4   : > { %1414 = vmatprep.subr.bf16.mxu0 %v4246_v50 }
  0xe7   : > { %1415 = vmatpush1.bf16.msra.mxu0 %v4244_v51 }
  0xe8   : > { %1416 = vmatprep.subr.bf16.mxu0 %v4252_v52 }
  0xeb   : > { %1417 = vmatpush1.bf16.msra.mxu0 %v4250_v53 }
  0xec   : > { %1418 = vmatprep.subr.bf16.mxu0 %v4258_v54 }
  0xef   : > { %1419 = vmatpush1.bf16.msra.mxu0 %v4256_v55 }
  0xf0   : > { %1420 = vmatprep.subr.bf16.mxu0 %v4264_v56 }
  0xf3   : > { %1421 = vmatpush1.bf16.msra.mxu0 %v4262_v57 }
  0xf4   : > { %1422 = vmatprep.subr.bf16.mxu0 %v4270_v58 }
  0xf7   : > { %1423 = vmatpush1.bf16.msra.mxu0 %v4268_v59 }
  0xf8   : > { %1424 = vmatprep.subr.bf16.mxu0 %v4276_v60 }
  0xfb   : > { %1425 = vmatpush1.bf16.msra.mxu0 %v4274_v61 }
  0xfc   : > { %1426 = vmatprep.subr.bf16.mxu0 %v4282_v34 }
  0xff   : > { %1427 = vmatpush1.bf16.msra.mxu0 %v4280_v36  ;;  %v4295_v36 = vld [vmem:[#allocation7 + $0x8] ss:$16 sps:$4 sm:$0xff]  }
 0x100   : > { %1428 = vmatprep.subr.bf16.mxu0 %v4288_v38  ;;  %v4301_v38 = vld [vmem:[#allocation7 + $0x28] ss:$16 sps:$4 sm:$0xff]  }
 0x103   : > { %1429 = vmatpush1.bf16.msra.mxu0 %v4286_v40  ;;  %v4307_v40 = vld [vmem:[#allocation7 + $0x48] ss:$16 sps:$4 sm:$0xff]  }
 0x199   : > { %v886_v62 = vpop.f32.mrb[0].mxu0 }
 0x19a   : > { %v888_v63 = vpop.f32.mrb[1].mxu0 }
 0x19b   : > { %v890_v1 = vpop.f32.mrb[2].mxu0 }
 0x19c   : > { %v938_v2 = vpack.c.bf16 %v890_v1, %v886_v62  ;;  %v892_v3 = vpop.f32.mrb[3].mxu0  ;;  %v4294_v1 = vld [vmem:[#allocation7 + $0x4] ss:$16 sps:$4 sm:$0xff]  }
 0x19d   : > { %v939_v4 = vpack.c.bf16 %v892_v3, %v888_v63  ;;  %v4292_v63 = vld [vmem:[#allocation7] ss:$16 sps:$4 sm:$0xff]   ;;  %1935 = vmatprep.subr.bf16.mxu0 %v4294_v1  ;;  %v4367_v1 = vld [vmem:[#allocation7 + $0x188] ss:$16 sps:$4 sm:$0xff]  }
 0x19e   : > { %v4298_v3 = vld [vmem:[#allocation7 + $0x20] ss:$16 sps:$4 sm:$0xff]  }
 0x19f   : > { %949 = vmatprep.subr.bf16.mxu1 %v939_v4  ;;  %v4306_v4 = vld [vmem:[#allocation7 + $0x44] ss:$16 sps:$4 sm:$0xff]  }
 0x1a0   : > { %950 = vmatpush1.bf16.msra.mxu1 %v938_v2  ;;  %v4300_v2 = vld [vmem:[#allocation7 + $0x24] ss:$16 sps:$4 sm:$0xff]  }
 0x1a1   : > { %1441 = vmatprep.subr.bf16.mxu1 %v4201_v5  ;;  %v4304_v5 = vld [vmem:[#allocation7 + $0x40] ss:$16 sps:$4 sm:$0xff]  }
 0x1a3   : > { %3719 = vmatmul.mubr.msk.bf16.vlgmr.msra.gmra.mrb[0].mxu1 %vm945_vm0, %v5157_v6 }
 0x1a4   : > { %1442 = vmatpush1.bf16.msra.mxu1 %v4199_v7  ;;  %v4312_v7 = vld [vmem:[#allocation7 + $0x64] ss:$16 sps:$4 sm:$0xff]  }
 0x1a5   : > { %1443 = vmatprep.subr.bf16.mxu1 %v4207_v8  ;;  %v4310_v8 = vld [vmem:[#allocation7 + $0x60] ss:$16 sps:$4 sm:$0xff]  }
 0x1a8   : > { %1444 = vmatpush1.bf16.msra.mxu1 %v4205_v9  ;;  %v4318_v9 = vld [vmem:[#allocation7 + $0x84] ss:$16 sps:$4 sm:$0xff]  }
 0x1a9   : > { %1445 = vmatprep.subr.bf16.mxu1 %v4213_v10  ;;  %v4316_v10 = vld [vmem:[#allocation7 + $0x80] ss:$16 sps:$4 sm:$0xff]  }
 0x1ac   : > { %1446 = vmatpush1.bf16.msra.mxu1 %v4211_v11  ;;  %v4324_v11 = vld [vmem:[#allocation7 + $0xa4] ss:$16 sps:$4 sm:$0xff]  }
 0x1ad   : > { %1447 = vmatprep.subr.bf16.mxu1 %v4219_v12  ;;  %v4322_v12 = vld [vmem:[#allocation7 + $0xa0] ss:$16 sps:$4 sm:$0xff]  }
 0x1b0   : > { %1448 = vmatpush1.bf16.msra.mxu1 %v4217_v13  ;;  %v4330_v13 = vld [vmem:[#allocation7 + $0xc4] ss:$16 sps:$4 sm:$0xff]  }
 0x1b1   : > { %1449 = vmatprep.subr.bf16.mxu1 %v4225_v14  ;;  %v4328_v14 = vld [vmem:[#allocation7 + $0xc0] ss:$16 sps:$4 sm:$0xff]  }
 0x1b4   : > { %1450 = vmatpush1.bf16.msra.mxu1 %v4223_v15  ;;  %v4336_v15 = vld [vmem:[#allocation7 + $0xe4] ss:$16 sps:$4 sm:$0xff]  }
 0x1b5   : > { %1451 = vmatprep.subr.bf16.mxu1 %v4231_v16  ;;  %v4334_v16 = vld [vmem:[#allocation7 + $0xe0] ss:$16 sps:$4 sm:$0xff]  }
 0x1b8   : > { %1452 = vmatpush1.bf16.msra.mxu1 %v4229_v17  ;;  %v4342_v17 = vld [vmem:[#allocation7 + $0x104] ss:$16 sps:$4 sm:$0xff]  }
 0x1b9   : > { %1453 = vmatprep.subr.bf16.mxu1 %v4237_v18  ;;  %v4340_v18 = vld [vmem:[#allocation7 + $0x100] ss:$16 sps:$4 sm:$0xff]  }
 0x1bc   : > { %1454 = vmatpush1.bf16.msra.mxu1 %v4235_v19  ;;  %v4348_v19 = vld [vmem:[#allocation7 + $0x124] ss:$16 sps:$4 sm:$0xff]  }
 0x1bd   : > { %1455 = vmatprep.subr.bf16.mxu1 %v4243_v20  ;;  %v4346_v20 = vld [vmem:[#allocation7 + $0x120] ss:$16 sps:$4 sm:$0xff]  }
 0x1c0   : > { %1456 = vmatpush1.bf16.msra.mxu1 %v4241_v21  ;;  %v4354_v21 = vld [vmem:[#allocation7 + $0x144] ss:$16 sps:$4 sm:$0xff]  }
 0x1c1   : > { %1457 = vmatprep.subr.bf16.mxu1 %v4249_v22  ;;  %v4352_v22 = vld [vmem:[#allocation7 + $0x140] ss:$16 sps:$4 sm:$0xff]  }
 0x1c4   : > { %1458 = vmatpush1.bf16.msra.mxu1 %v4247_v23  ;;  %v4360_v23 = vld [vmem:[#allocation7 + $0x164] ss:$16 sps:$4 sm:$0xff]  }
 0x1c5   : > { %1459 = vmatprep.subr.bf16.mxu1 %v4255_v24  ;;  %v4358_v24 = vld [vmem:[#allocation7 + $0x160] ss:$16 sps:$4 sm:$0xff]  }
 0x1c8   : > { %1460 = vmatpush1.bf16.msra.mxu1 %v4253_v25  ;;  %v4366_v25 = vld [vmem:[#allocation7 + $0x184] ss:$16 sps:$4 sm:$0xff]  }
 0x1c9   : > { %1461 = vmatprep.subr.bf16.mxu1 %v4261_v26  ;;  %v4364_v26 = vld [vmem:[#allocation7 + $0x180] ss:$16 sps:$4 sm:$0xff]  }
 0x1cc   : > { %1462 = vmatpush1.bf16.msra.mxu1 %v4259_v27  ;;  %v4372_v27 = vld [vmem:[#allocation7 + $0x1a4] ss:$16 sps:$4 sm:$0xff]  }
 0x1cd   : > { %1463 = vmatprep.subr.bf16.mxu1 %v4267_v28  ;;  %v4370_v28 = vld [vmem:[#allocation7 + $0x1a0] ss:$16 sps:$4 sm:$0xff]  }
 0x1d0   : > { %1464 = vmatpush1.bf16.msra.mxu1 %v4265_v29 }
 0x1d1   : > { %1465 = vmatprep.subr.bf16.mxu1 %v4273_v30 }
 0x1d4   : > { %1466 = vmatpush1.bf16.msra.mxu1 %v4271_v31 }
 0x1d5   : > { %1467 = vmatprep.subr.bf16.mxu1 %v4279_v32 }
 0x1d8   : > { %1468 = vmatpush1.bf16.msra.mxu1 %v4277_v33 }
 0x1d9   : > { %1469 = vmatprep.subr.bf16.mxu1 %v4285_v35  ;;  %v4297_v35 = vld [vmem:[#allocation7 + $0xc] ss:$16 sps:$4 sm:$0xff]  }
 0x1dc   : > { %1470 = vmatpush1.bf16.msra.mxu1 %v4283_v37  ;;  %v4303_v37 = vld [vmem:[#allocation7 + $0x2c] ss:$16 sps:$4 sm:$0xff]  }
 0x1dd   : > { %1471 = vmatprep.subr.bf16.mxu1 %v4291_v39  ;;  %v4309_v39 = vld [vmem:[#allocation7 + $0x4c] ss:$16 sps:$4 sm:$0xff]  }
 0x1e0   : > { %1472 = vmatpush1.bf16.msra.mxu1 %v4289_v41  ;;  %v4315_v41 = vld [vmem:[#allocation7 + $0x6c] ss:$16 sps:$4 sm:$0xff]  }
 0x276   : > { %v983_v49 = vpop.f32.mrb[0].mxu1 }
 0x277   : > { %v1004_v50 = vadd.f32 %v997_v47, %v983_v49  ;;  %v985_v51 = vpop.f32.mrb[1].mxu1  ;;  %v4327_v49 = vld [vmem:[#allocation7 + $0xac] ss:$16 sps:$4 sm:$0xff]  }
 0x278   : > { %v1005_v52 = vadd.f32 %v1001_v48, %v985_v51  ;;  %v987_v53 = vpop.f32.mrb[2].mxu1  ;;  %v4333_v51 = vld [vmem:[#allocation7 + $0xcc] ss:$16 sps:$4 sm:$0xff]  }
 0x279   : > { %v1006_v54 = vadd.f32 %v997_v47, %v987_v53  ;;  %v989_v55 = vpop.f32.mrb[3].mxu1  ;;  %v1008_v57 = vmax.f32 %v1004_v50, 0.0  ;;  %v4321_v47 = vld [vmem:[#allocation7 + $0x8c] ss:$16 sps:$4 sm:$0xff]   ;;  %v4325_v50 = vld [vmem:[#allocation7 + $0xa8] ss:$16 sps:$4 sm:$0xff]  }
 0x27a   : > { %v1007_v56 = vadd.f32 %v1001_v48, %v989_v55  ;;  %v1009_v59 = vmax.f32 %v1005_v52, 0.0  ;;  %v4319_v48 = vld [vmem:[#allocation7 + $0x88] ss:$16 sps:$4 sm:$0xff]   ;;  %v4339_v53 = vld [vmem:[#allocation7 + $0xec] ss:$16 sps:$4 sm:$0xff]  }
 0x27b   : > { %v1010_v58 = vmax.f32 %v1006_v54, 0.0  ;;  %v4331_v52 = vld [vmem:[#allocation7 + $0xc8] ss:$16 sps:$4 sm:$0xff]   ;;  %v4345_v55 = vld [vmem:[#allocation7 + $0x10c] ss:$16 sps:$4 sm:$0xff]  }
 0x27c   : > { %v1011_v60 = vmax.f32 %v1007_v56, 0.0  ;;  %v4337_v54 = vld [vmem:[#allocation7 + $0xe8] ss:$16 sps:$4 sm:$0xff]  }
 0x27d   : > { %v1012_v61 = vpack.c.bf16 %v1010_v58, %v1008_v57  ;;  %v4343_v56 = vld [vmem:[#allocation7 + $0x108] ss:$16 sps:$4 sm:$0xff]   ;;  %v4351_v57 = vld [vmem:[#allocation7 + $0x12c] ss:$16 sps:$4 sm:$0xff]  }
 0x27e   : > { %v1013_v62 = vpack.c.bf16 %v1011_v60, %v1009_v59  ;;  %v4349_v58 = vld [vmem:[#allocation7 + $0x128] ss:$16 sps:$4 sm:$0xff]   ;;  %v4357_v59 = vld [vmem:[#allocation7 + $0x14c] ss:$16 sps:$4 sm:$0xff]  }
 0x27f   : > { %v4355_v60 = vld [vmem:[#allocation7 + $0x148] ss:$16 sps:$4 sm:$0xff]  }
 0x280   : > { %1430 = vmatprep.mubr.bf16.mxu0 %v1013_v62  ;;  %1473 = vmatprep.mubr.bf16.mxu1 %v1013_v62  ;;  %v4361_v62 = vld [vmem:[#allocation7 + $0x168] ss:$16 sps:$4 sm:$0xff]  }
 0x281   : > { %1431 = vmatmul.mubr.bf16.vlgmr.msra.gmra.mrb[4].mxu0 %v1012_v61  ;;  %1474 = vmatmul.mubr.bf16.vlgmr.msra.gmra.mrb[4].mxu1 %v1012_v61  ;;  %v4363_v61 = vld [vmem:[#allocation7 + $0x16c] ss:$16 sps:$4 sm:$0xff]  }
 0x282   : > { %1518 = vmatprep.mubr.bf16.mxu1 %v4838_v0  ;;  %1936 = vmatpush1.bf16.msra.mxu0 %v4292_v63  ;;  %v4369_v63 = vld [vmem:[#allocation7 + $0x18c] ss:$16 sps:$4 sm:$0xff]  }
 0x283   : > { %1937 = vmatprep.subr.bf16.mxu0 %v4300_v2  ;;  %v4375_v2 = vld [vmem:[#allocation7 + $0x1ac] ss:$16 sps:$4 sm:$0xff]  }
 0x286   : > { %1938 = vmatpush1.bf16.msra.mxu0 %v4298_v3  ;;  %v4373_v3 = vld [vmem:[#allocation7 + $0x1a8] ss:$16 sps:$4 sm:$0xff]  }
 0x287   : > { %1939 = vmatprep.subr.bf16.mxu0 %v4306_v4  ;;  %v4378_v4 = vld [vmem:[#allocation7 + $0x1c4] ss:$16 sps:$4 sm:$0xff]  }
 0x28a   : > { %1940 = vmatpush1.bf16.msra.mxu0 %v4304_v5  ;;  %v4381_v5 = vld [vmem:[#allocation7 + $0x1cc] ss:$16 sps:$4 sm:$0xff]  }
 0x28b   : > { %1941 = vmatprep.subr.bf16.mxu0 %v4312_v7  ;;  %v4376_v7 = vld [vmem:[#allocation7 + $0x1c0] ss:$16 sps:$4 sm:$0xff]  }
 0x28e   : > { %1942 = vmatpush1.bf16.msra.mxu0 %v4310_v8  ;;  %v4379_v8 = vld [vmem:[#allocation7 + $0x1c8] ss:$16 sps:$4 sm:$0xff]  }
 0x28f   : > { %1943 = vmatprep.subr.bf16.mxu0 %v4318_v9  ;;  %v4384_v9 = vld [vmem:[#allocation7 + $0x1e4] ss:$16 sps:$4 sm:$0xff]  }
 0x292   : > { %1944 = vmatpush1.bf16.msra.mxu0 %v4316_v10  ;;  %v4387_v10 = vld [vmem:[#allocation7 + $0x1ec] ss:$16 sps:$4 sm:$0xff]  }
 0x293   : > { %1945 = vmatprep.subr.bf16.mxu0 %v4324_v11  ;;  %v4382_v11 = vld [vmem:[#allocation7 + $0x1e0] ss:$16 sps:$4 sm:$0xff]  }
 0x296   : > { %1946 = vmatpush1.bf16.msra.mxu0 %v4322_v12  ;;  %v4385_v12 = vld [vmem:[#allocation7 + $0x1e8] ss:$16 sps:$4 sm:$0xff]  }
 0x297   : > { %1947 = vmatprep.subr.bf16.mxu0 %v4330_v13  ;;  %v1529_v13 = vld [vmem:[%s5348_s5] sm:$0x3] }
 0x29a   : > { %1948 = vmatpush1.bf16.msra.mxu0 %v4328_v14  ;;  %v1534_v14 = vrot.slane %v1529_v13, %v5165_v44 }
 0x29b   : > { %1949 = vmatprep.subr.bf16.mxu0 %v4336_v15  ;;  %v1538_v15 = vrot.slane %v1529_v13, %v5171_v46  ;;  %v4409_v13 = vld [vmem:[#allocation8 + $0x68] ss:$16 sps:$4 sm:$0xff]  }
 0x29e   : > { %1950 = vmatpush1.bf16.msra.mxu0 %v4334_v16 }
 0x29f   : > { %1951 = vmatprep.subr.bf16.mxu0 %v4342_v17 }
 0x2a2   : > { %1952 = vmatpush1.bf16.msra.mxu0 %v4340_v18 }
 0x2a3   : > { %1953 = vmatprep.subr.bf16.mxu0 %v4348_v19 }
 0x2a6   : > { %1954 = vmatpush1.bf16.msra.mxu0 %v4346_v20 }
 0x2a7   : > { %1955 = vmatprep.subr.bf16.mxu0 %v4354_v21 }
 0x2aa   : > { %1956 = vmatpush1.bf16.msra.mxu0 %v4352_v22 }
 0x2ab   : > { %1957 = vmatprep.subr.bf16.mxu0 %v4360_v23 }
 0x2ae   : > { %1958 = vmatpush1.bf16.msra.mxu0 %v4358_v24 }
 0x2af   : > { %1959 = vmatprep.subr.bf16.mxu0 %v4366_v25 }
 0x2b2   : > { %1960 = vmatpush1.bf16.msra.mxu0 %v4364_v26 }
 0x2b3   : > { %1961 = vmatprep.subr.bf16.mxu0 %v4372_v27 }
 0x2b6   : > { %1962 = vmatpush1.bf16.msra.mxu0 %v4370_v28 }
 0x2b7   : > { %1963 = vmatprep.subr.bf16.mxu0 %v4378_v4 }
 0x2ba   : > { %1964 = vmatpush1.bf16.msra.mxu0 %v4376_v7  ;;  %v4391_v7 = vld [vmem:[#allocation8 + $0x8] ss:$16 sps:$4 sm:$0xff]  }
 0x2bb   : > { %1965 = vmatprep.subr.bf16.mxu0 %v4384_v9  ;;  %v4397_v9 = vld [vmem:[#allocation8 + $0x28] ss:$16 sps:$4 sm:$0xff]  }
 0x2be   : > { %1966 = vmatpush1.bf16.msra.mxu0 %v4382_v11  ;;  %v4403_v11 = vld [vmem:[#allocation8 + $0x48] ss:$16 sps:$4 sm:$0xff]  }
 0x354   : > { %v1432_v29 = vpop.f32.mrb[4].mxu0 }
 0x355   : > { %v1434_v30 = vpop.f32.mrb[5].mxu0 }
 0x356   : > { %v1436_v31 = vpop.f32.mrb[6].mxu0 }
 0x357   : > { %v1484_v32 = vpack.c.bf16 %v1436_v31, %v1432_v29  ;;  %v1438_v33 = vpop.f32.mrb[7].mxu0  ;;  %v4390_v31 = vld [vmem:[#allocation8 + $0x4] ss:$16 sps:$4 sm:$0xff]  }
 0x358   : > { %v1485_v34 = vpack.c.bf16 %v1438_v33, %v1434_v30  ;;  %v4388_v30 = vld [vmem:[#allocation8] ss:$16 sps:$4 sm:$0xff]   ;;  %2472 = vmatprep.subr.bf16.mxu0 %v4390_v31  ;;  %v4463_v31 = vld [vmem:[#allocation8 + $0x188] ss:$16 sps:$4 sm:$0xff]  }
 0x359   : > { %v4394_v33 = vld [vmem:[#allocation8 + $0x20] ss:$16 sps:$4 sm:$0xff]  }
 0x35a   : > { %1486 = vmatprep.subr.bf16.mxu1 %v1485_v34  ;;  %v4402_v34 = vld [vmem:[#allocation8 + $0x44] ss:$16 sps:$4 sm:$0xff]  }
 0x35b   : > { %1487 = vmatpush1.bf16.msra.mxu1 %v1484_v32  ;;  %v4396_v32 = vld [vmem:[#allocation8 + $0x24] ss:$16 sps:$4 sm:$0xff]  }
 0x35c   : > { %1978 = vmatprep.subr.bf16.mxu1 %v4297_v35  ;;  %v4400_v35 = vld [vmem:[#allocation8 + $0x40] ss:$16 sps:$4 sm:$0xff]  }
 0x35e   : > { %3784 = vmatmul.mubr.msk.bf16.vlgmr.msra.gmra.mrb[4].mxu1 %vm945_vm0, %v5157_v6 }
 0x35f   : > { %1979 = vmatpush1.bf16.msra.mxu1 %v4295_v36  ;;  %v4408_v36 = vld [vmem:[#allocation8 + $0x64] ss:$16 sps:$4 sm:$0xff]  }
 0x360   : > { %1980 = vmatprep.subr.bf16.mxu1 %v4303_v37  ;;  %v4406_v37 = vld [vmem:[#allocation8 + $0x60] ss:$16 sps:$4 sm:$0xff]  }
 0x363   : > { %1981 = vmatpush1.bf16.msra.mxu1 %v4301_v38  ;;  %v4414_v38 = vld [vmem:[#allocation8 + $0x84] ss:$16 sps:$4 sm:$0xff]  }
 0x364   : > { %1982 = vmatprep.subr.bf16.mxu1 %v4309_v39  ;;  %v4412_v39 = vld [vmem:[#allocation8 + $0x80] ss:$16 sps:$4 sm:$0xff]  }
 0x367   : > { %1983 = vmatpush1.bf16.msra.mxu1 %v4307_v40  ;;  %v4420_v40 = vld [vmem:[#allocation8 + $0xa4] ss:$16 sps:$4 sm:$0xff]  }
 0x368   : > { %1984 = vmatprep.subr.bf16.mxu1 %v4315_v41  ;;  %v4418_v41 = vld [vmem:[#allocation8 + $0xa0] ss:$16 sps:$4 sm:$0xff]  }
 0x36b   : > { %1985 = vmatpush1.bf16.msra.mxu1 %v4313_v45  ;;  %v4426_v45 = vld [vmem:[#allocation8 + $0xc4] ss:$16 sps:$4 sm:$0xff]  }
 0x36c   : > { %1986 = vmatprep.subr.bf16.mxu1 %v4321_v47  ;;  %v4424_v47 = vld [vmem:[#allocation8 + $0xc0] ss:$16 sps:$4 sm:$0xff]  }
 0x36f   : > { %1987 = vmatpush1.bf16.msra.mxu1 %v4319_v48  ;;  %v4432_v48 = vld [vmem:[#allocation8 + $0xe4] ss:$16 sps:$4 sm:$0xff]  }
 0x370   : > { %1988 = vmatprep.subr.bf16.mxu1 %v4327_v49  ;;  %v4430_v49 = vld [vmem:[#allocation8 + $0xe0] ss:$16 sps:$4 sm:$0xff]  }
 0x373   : > { %1989 = vmatpush1.bf16.msra.mxu1 %v4325_v50  ;;  %v4438_v50 = vld [vmem:[#allocation8 + $0x104] ss:$16 sps:$4 sm:$0xff]  }
 0x374   : > { %1990 = vmatprep.subr.bf16.mxu1 %v4333_v51  ;;  %v4436_v51 = vld [vmem:[#allocation8 + $0x100] ss:$16 sps:$4 sm:$0xff]  }
 0x377   : > { %1991 = vmatpush1.bf16.msra.mxu1 %v4331_v52  ;;  %v4444_v52 = vld [vmem:[#allocation8 + $0x124] ss:$16 sps:$4 sm:$0xff]  }
 0x378   : > { %1992 = vmatprep.subr.bf16.mxu1 %v4339_v53  ;;  %v4442_v53 = vld [vmem:[#allocation8 + $0x120] ss:$16 sps:$4 sm:$0xff]  }
 0x37b   : > { %1993 = vmatpush1.bf16.msra.mxu1 %v4337_v54  ;;  %v4450_v54 = vld [vmem:[#allocation8 + $0x144] ss:$16 sps:$4 sm:$0xff]  }
 0x37c   : > { %1994 = vmatprep.subr.bf16.mxu1 %v4345_v55  ;;  %v4448_v55 = vld [vmem:[#allocation8 + $0x140] ss:$16 sps:$4 sm:$0xff]  }
 0x37f   : > { %1995 = vmatpush1.bf16.msra.mxu1 %v4343_v56  ;;  %v4456_v56 = vld [vmem:[#allocation8 + $0x164] ss:$16 sps:$4 sm:$0xff]  }
 0x380   : > { %1996 = vmatprep.subr.bf16.mxu1 %v4351_v57  ;;  %v4454_v57 = vld [vmem:[#allocation8 + $0x160] ss:$16 sps:$4 sm:$0xff]  }
 0x383   : > { %1997 = vmatpush1.bf16.msra.mxu1 %v4349_v58  ;;  %v4462_v58 = vld [vmem:[#allocation8 + $0x184] ss:$16 sps:$4 sm:$0xff]  }
 0x384   : > { %1998 = vmatprep.subr.bf16.mxu1 %v4357_v59  ;;  %v4460_v59 = vld [vmem:[#allocation8 + $0x180] ss:$16 sps:$4 sm:$0xff]  }
 0x387   : > { %1999 = vmatpush1.bf16.msra.mxu1 %v4355_v60  ;;  %v4468_v60 = vld [vmem:[#allocation8 + $0x1a4] ss:$16 sps:$4 sm:$0xff]  }
 0x388   : > { %2000 = vmatprep.subr.bf16.mxu1 %v4363_v61  ;;  %v4466_v61 = vld [vmem:[#allocation8 + $0x1a0] ss:$16 sps:$4 sm:$0xff]  }
 0x38b   : > { %2001 = vmatpush1.bf16.msra.mxu1 %v4361_v62 }
 0x38c   : > { %2002 = vmatprep.subr.bf16.mxu1 %v4369_v63 }
 0x38f   : > { %2003 = vmatpush1.bf16.msra.mxu1 %v4367_v1 }
 0x390   : > { %2004 = vmatprep.subr.bf16.mxu1 %v4375_v2 }
 0x393   : > { %2005 = vmatpush1.bf16.msra.mxu1 %v4373_v3 }
 0x394   : > { %2006 = vmatprep.subr.bf16.mxu1 %v4381_v5  ;;  %v4393_v5 = vld [vmem:[#allocation8 + $0xc] ss:$16 sps:$4 sm:$0xff]  }
 0x397   : > { %2007 = vmatpush1.bf16.msra.mxu1 %v4379_v8  ;;  %v4399_v8 = vld [vmem:[#allocation8 + $0x2c] ss:$16 sps:$4 sm:$0xff]  }
 0x398   : > { %2008 = vmatprep.subr.bf16.mxu1 %v4387_v10  ;;  %v4405_v10 = vld [vmem:[#allocation8 + $0x4c] ss:$16 sps:$4 sm:$0xff]  }
 0x39b   : > { %2009 = vmatpush1.bf16.msra.mxu1 %v4385_v12  ;;  %v4411_v12 = vld [vmem:[#allocation8 + $0x6c] ss:$16 sps:$4 sm:$0xff]  }
 0x431   : > { %v1520_v16 = vpop.f32.mrb[4].mxu1 }
 0x432   : > { %v1541_v17 = vadd.f32 %v1534_v14, %v1520_v16  ;;  %v1522_v18 = vpop.f32.mrb[5].mxu1  ;;  %v4423_v16 = vld [vmem:[#allocation8 + $0xac] ss:$16 sps:$4 sm:$0xff]  }
 0x433   : > { %v1542_v19 = vadd.f32 %v1538_v15, %v1522_v18  ;;  %v1524_v20 = vpop.f32.mrb[6].mxu1  ;;  %v4429_v18 = vld [vmem:[#allocation8 + $0xcc] ss:$16 sps:$4 sm:$0xff]  }
 0x434   : > { %v1543_v21 = vadd.f32 %v1534_v14, %v1524_v20  ;;  %v1526_v22 = vpop.f32.mrb[7].mxu1  ;;  %v1545_v24 = vmax.f32 %v1541_v17, 0.0  ;;  %v4417_v14 = vld [vmem:[#allocation8 + $0x8c] ss:$16 sps:$4 sm:$0xff]   ;;  %v4421_v17 = vld [vmem:[#allocation8 + $0xa8] ss:$16 sps:$4 sm:$0xff]  }
 0x435   : > { %v1544_v23 = vadd.f32 %v1538_v15, %v1526_v22  ;;  %v1546_v26 = vmax.f32 %v1542_v19, 0.0  ;;  %v4415_v15 = vld [vmem:[#allocation8 + $0x88] ss:$16 sps:$4 sm:$0xff]   ;;  %v4435_v20 = vld [vmem:[#allocation8 + $0xec] ss:$16 sps:$4 sm:$0xff]  }
 0x436   : > { %v1547_v25 = vmax.f32 %v1543_v21, 0.0  ;;  %v4427_v19 = vld [vmem:[#allocation8 + $0xc8] ss:$16 sps:$4 sm:$0xff]   ;;  %v4441_v22 = vld [vmem:[#allocation8 + $0x10c] ss:$16 sps:$4 sm:$0xff]  }
 0x437   : > { %v1548_v27 = vmax.f32 %v1544_v23, 0.0  ;;  %v4433_v21 = vld [vmem:[#allocation8 + $0xe8] ss:$16 sps:$4 sm:$0xff]  }
 0x438   : > { %v1549_v28 = vpack.c.bf16 %v1547_v25, %v1545_v24  ;;  %v4439_v23 = vld [vmem:[#allocation8 + $0x108] ss:$16 sps:$4 sm:$0xff]   ;;  %v4447_v24 = vld [vmem:[#allocation8 + $0x12c] ss:$16 sps:$4 sm:$0xff]  }
 0x439   : > { %v1550_v29 = vpack.c.bf16 %v1548_v27, %v1546_v26  ;;  %v4445_v25 = vld [vmem:[#allocation8 + $0x128] ss:$16 sps:$4 sm:$0xff]   ;;  %v4453_v26 = vld [vmem:[#allocation8 + $0x14c] ss:$16 sps:$4 sm:$0xff]  }
 0x43a   : > { %v4451_v27 = vld [vmem:[#allocation8 + $0x148] ss:$16 sps:$4 sm:$0xff]  }
 0x43b   : > { %1967 = vmatprep.mubr.bf16.mxu0 %v1550_v29  ;;  %2010 = vmatprep.mubr.bf16.mxu1 %v1550_v29  ;;  %v4457_v29 = vld [vmem:[#allocation8 + $0x168] ss:$16 sps:$4 sm:$0xff]  }
 0x43c   : > { %1968 = vmatmul.mubr.bf16.vlgmr.msra.gmra.mrb[8].mxu0 %v1549_v28  ;;  %2011 = vmatmul.mubr.bf16.vlgmr.msra.gmra.mrb[8].mxu1 %v1549_v28  ;;  %v4459_v28 = vld [vmem:[#allocation8 + $0x16c] ss:$16 sps:$4 sm:$0xff]  }
 0x43d   : > { %2055 = vmatprep.mubr.bf16.mxu1 %v4838_v0  ;;  %2473 = vmatpush1.bf16.msra.mxu0 %v4388_v30  ;;  %v4465_v30 = vld [vmem:[#allocation8 + $0x18c] ss:$16 sps:$4 sm:$0xff]  }
 0x43e   : > { %2474 = vmatprep.subr.bf16.mxu0 %v4396_v32  ;;  %v4471_v32 = vld [vmem:[#allocation8 + $0x1ac] ss:$16 sps:$4 sm:$0xff]  }
 0x441   : > { %2475 = vmatpush1.bf16.msra.mxu0 %v4394_v33  ;;  %v4469_v33 = vld [vmem:[#allocation8 + $0x1a8] ss:$16 sps:$4 sm:$0xff]  }
 0x442   : > { %2476 = vmatprep.subr.bf16.mxu0 %v4402_v34  ;;  %v4474_v34 = vld [vmem:[#allocation8 + $0x1c4] ss:$16 sps:$4 sm:$0xff]  }
 0x445   : > { %2477 = vmatpush1.bf16.msra.mxu0 %v4400_v35  ;;  %v4477_v35 = vld [vmem:[#allocation8 + $0x1cc] ss:$16 sps:$4 sm:$0xff]  }
 0x446   : > { %2478 = vmatprep.subr.bf16.mxu0 %v4408_v36  ;;  %v4472_v36 = vld [vmem:[#allocation8 + $0x1c0] ss:$16 sps:$4 sm:$0xff]  }
 0x449   : > { %2479 = vmatpush1.bf16.msra.mxu0 %v4406_v37  ;;  %v4475_v37 = vld [vmem:[#allocation8 + $0x1c8] ss:$16 sps:$4 sm:$0xff]  }
 0x44a   : > { %2480 = vmatprep.subr.bf16.mxu0 %v4414_v38  ;;  %v4480_v38 = vld [vmem:[#allocation8 + $0x1e4] ss:$16 sps:$4 sm:$0xff]  }
 0x44d   : > { %2481 = vmatpush1.bf16.msra.mxu0 %v4412_v39  ;;  %v4483_v39 = vld [vmem:[#allocation8 + $0x1ec] ss:$16 sps:$4 sm:$0xff]  }
 0x44e   : > { %2482 = vmatprep.subr.bf16.mxu0 %v4420_v40  ;;  %v4478_v40 = vld [vmem:[#allocation8 + $0x1e0] ss:$16 sps:$4 sm:$0xff]  }
 0x451   : > { %2483 = vmatpush1.bf16.msra.mxu0 %v4418_v41  ;;  %v4481_v41 = vld [vmem:[#allocation8 + $0x1e8] ss:$16 sps:$4 sm:$0xff]  }
 0x452   : > { %2484 = vmatprep.subr.bf16.mxu0 %v4426_v45  ;;  %v2066_v45 = vld [vmem:[%s5350_s7] sm:$0x3] }
 0x455   : > { %2485 = vmatpush1.bf16.msra.mxu0 %v4424_v47  ;;  %v2071_v47 = vrot.slane %v2066_v45, %v5165_v44 }
 0x456   : > { %2486 = vmatprep.subr.bf16.mxu0 %v4432_v48  ;;  %v2075_v48 = vrot.slane %v2066_v45, %v5171_v46  ;;  %v4505_v45 = vld [vmem:[#allocation10 + $0x68] ss:$16 sps:$4 sm:$0xff]  }
 0x459   : > { %2487 = vmatpush1.bf16.msra.mxu0 %v4430_v49 }
 0x45a   : > { %2488 = vmatprep.subr.bf16.mxu0 %v4438_v50 }
 0x45d   : > { %2489 = vmatpush1.bf16.msra.mxu0 %v4436_v51 }
 0x45e   : > { %2490 = vmatprep.subr.bf16.mxu0 %v4444_v52 }
 0x461   : > { %2491 = vmatpush1.bf16.msra.mxu0 %v4442_v53 }
 0x462   : > { %2492 = vmatprep.subr.bf16.mxu0 %v4450_v54 }
 0x465   : > { %2493 = vmatpush1.bf16.msra.mxu0 %v4448_v55 }
 0x466   : > { %2494 = vmatprep.subr.bf16.mxu0 %v4456_v56 }
 0x469   : > { %2495 = vmatpush1.bf16.msra.mxu0 %v4454_v57 }
 0x46a   : > { %2496 = vmatprep.subr.bf16.mxu0 %v4462_v58 }
 0x46d   : > { %2497 = vmatpush1.bf16.msra.mxu0 %v4460_v59 }
 0x46e   : > { %2498 = vmatprep.subr.bf16.mxu0 %v4468_v60 }
 0x471   : > { %2499 = vmatpush1.bf16.msra.mxu0 %v4466_v61 }
 0x472   : > { %2500 = vmatprep.subr.bf16.mxu0 %v4474_v34 }
 0x475   : > { %2501 = vmatpush1.bf16.msra.mxu0 %v4472_v36  ;;  %v4487_v36 = vld [vmem:[#allocation10 + $0x8] ss:$16 sps:$4 sm:$0xff]  }
 0x476   : > { %2502 = vmatprep.subr.bf16.mxu0 %v4480_v38  ;;  %v4493_v38 = vld [vmem:[#allocation10 + $0x28] ss:$16 sps:$4 sm:$0xff]  }
 0x479   : > { %2503 = vmatpush1.bf16.msra.mxu0 %v4478_v40  ;;  %v4499_v40 = vld [vmem:[#allocation10 + $0x48] ss:$16 sps:$4 sm:$0xff]  }
 0x50f   : > { %v1969_v62 = vpop.f32.mrb[8].mxu0 }
 0x510   : > { %v1971_v63 = vpop.f32.mrb[9].mxu0 }
 0x511   : > { %v1973_v1 = vpop.f32.mrb[10].mxu0 }
 0x512   : > { %v2021_v2 = vpack.c.bf16 %v1973_v1, %v1969_v62  ;;  %v1975_v3 = vpop.f32.mrb[11].mxu0  ;;  %v4486_v1 = vld [vmem:[#allocation10 + $0x4] ss:$16 sps:$4 sm:$0xff]  }
 0x513   : > { %v2022_v4 = vpack.c.bf16 %v1975_v3, %v1971_v63  ;;  %v4484_v63 = vld [vmem:[#allocation10] ss:$16 sps:$4 sm:$0xff]   ;;  %3009 = vmatprep.subr.bf16.mxu0 %v4486_v1  ;;  %v4567_v1 = vld [vmem:[#allocation10 + $0x1ac] ss:$16 sps:$4 sm:$0xff]  }
 0x514   : > { %v4490_v3 = vld [vmem:[#allocation10 + $0x20] ss:$16 sps:$4 sm:$0xff]  }
 0x515   : > { %2023 = vmatprep.subr.bf16.mxu1 %v2022_v4  ;;  %v4498_v4 = vld [vmem:[#allocation10 + $0x44] ss:$16 sps:$4 sm:$0xff]  }
 0x516   : > { %2024 = vmatpush1.bf16.msra.mxu1 %v2021_v2  ;;  %v4492_v2 = vld [vmem:[#allocation10 + $0x24] ss:$16 sps:$4 sm:$0xff]  }
 0x517   : > { %2515 = vmatprep.subr.bf16.mxu1 %v4393_v5  ;;  %v4496_v5 = vld [vmem:[#allocation10 + $0x40] ss:$16 sps:$4 sm:$0xff]  }
 0x519   : > { %3849 = vmatmul.mubr.msk.bf16.vlgmr.msra.gmra.mrb[8].mxu1 %vm945_vm0, %v5157_v6 }
 0x51a   : > { %2516 = vmatpush1.bf16.msra.mxu1 %v4391_v7  ;;  %v4504_v7 = vld [vmem:[#allocation10 + $0x64] ss:$16 sps:$4 sm:$0xff]  }
 0x51b   : > { %2517 = vmatprep.subr.bf16.mxu1 %v4399_v8  ;;  %v4502_v8 = vld [vmem:[#allocation10 + $0x60] ss:$16 sps:$4 sm:$0xff]  }
 0x51e   : > { %2518 = vmatpush1.bf16.msra.mxu1 %v4397_v9  ;;  %v4510_v9 = vld [vmem:[#allocation10 + $0x84] ss:$16 sps:$4 sm:$0xff]  }
 0x51f   : > { %2519 = vmatprep.subr.bf16.mxu1 %v4405_v10  ;;  %v4508_v10 = vld [vmem:[#allocation10 + $0x80] ss:$16 sps:$4 sm:$0xff]  }
 0x522   : > { %2520 = vmatpush1.bf16.msra.mxu1 %v4403_v11  ;;  %v4516_v11 = vld [vmem:[#allocation10 + $0xa4] ss:$16 sps:$4 sm:$0xff]  }
 0x523   : > { %2521 = vmatprep.subr.bf16.mxu1 %v4411_v12  ;;  %v4514_v12 = vld [vmem:[#allocation10 + $0xa0] ss:$16 sps:$4 sm:$0xff]  }
 0x526   : > { %2522 = vmatpush1.bf16.msra.mxu1 %v4409_v13  ;;  %v4522_v13 = vld [vmem:[#allocation10 + $0xc4] ss:$16 sps:$4 sm:$0xff]  }
 0x527   : > { %2523 = vmatprep.subr.bf16.mxu1 %v4417_v14  ;;  %v4520_v14 = vld [vmem:[#allocation10 + $0xc0] ss:$16 sps:$4 sm:$0xff]  }
 0x52a   : > { %2524 = vmatpush1.bf16.msra.mxu1 %v4415_v15  ;;  %v4528_v15 = vld [vmem:[#allocation10 + $0xe4] ss:$16 sps:$4 sm:$0xff]  }
 0x52b   : > { %2525 = vmatprep.subr.bf16.mxu1 %v4423_v16  ;;  %v4526_v16 = vld [vmem:[#allocation10 + $0xe0] ss:$16 sps:$4 sm:$0xff]  }
 0x52e   : > { %2526 = vmatpush1.bf16.msra.mxu1 %v4421_v17  ;;  %v4534_v17 = vld [vmem:[#allocation10 + $0x104] ss:$16 sps:$4 sm:$0xff]  }
 0x52f   : > { %2527 = vmatprep.subr.bf16.mxu1 %v4429_v18  ;;  %v4532_v18 = vld [vmem:[#allocation10 + $0x100] ss:$16 sps:$4 sm:$0xff]  }
 0x532   : > { %2528 = vmatpush1.bf16.msra.mxu1 %v4427_v19  ;;  %v4540_v19 = vld [vmem:[#allocation10 + $0x124] ss:$16 sps:$4 sm:$0xff]  }
 0x533   : > { %2529 = vmatprep.subr.bf16.mxu1 %v4435_v20  ;;  %v4538_v20 = vld [vmem:[#allocation10 + $0x120] ss:$16 sps:$4 sm:$0xff]  }
 0x536   : > { %2530 = vmatpush1.bf16.msra.mxu1 %v4433_v21  ;;  %v4546_v21 = vld [vmem:[#allocation10 + $0x144] ss:$16 sps:$4 sm:$0xff]  }
 0x537   : > { %2531 = vmatprep.subr.bf16.mxu1 %v4441_v22  ;;  %v4544_v22 = vld [vmem:[#allocation10 + $0x140] ss:$16 sps:$4 sm:$0xff]  }
 0x53a   : > { %2532 = vmatpush1.bf16.msra.mxu1 %v4439_v23  ;;  %v4552_v23 = vld [vmem:[#allocation10 + $0x164] ss:$16 sps:$4 sm:$0xff]  }
 0x53b   : > { %2533 = vmatprep.subr.bf16.mxu1 %v4447_v24  ;;  %v4550_v24 = vld [vmem:[#allocation10 + $0x160] ss:$16 sps:$4 sm:$0xff]  }
 0x53e   : > { %2534 = vmatpush1.bf16.msra.mxu1 %v4445_v25  ;;  %v4558_v25 = vld [vmem:[#allocation10 + $0x184] ss:$16 sps:$4 sm:$0xff]  }
 0x53f   : > { %2535 = vmatprep.subr.bf16.mxu1 %v4453_v26  ;;  %v4556_v26 = vld [vmem:[#allocation10 + $0x180] ss:$16 sps:$4 sm:$0xff]  }
 0x542   : > { %2536 = vmatpush1.bf16.msra.mxu1 %v4451_v27  ;;  %v4564_v27 = vld [vmem:[#allocation10 + $0x1a4] ss:$16 sps:$4 sm:$0xff]  }
 0x543   : > { %2537 = vmatprep.subr.bf16.mxu1 %v4459_v28  ;;  %v4562_v28 = vld [vmem:[#allocation10 + $0x1a0] ss:$16 sps:$4 sm:$0xff]  }
 0x546   : > { %2538 = vmatpush1.bf16.msra.mxu1 %v4457_v29 }
 0x547   : > { %2539 = vmatprep.subr.bf16.mxu1 %v4465_v30 }
 0x54a   : > { %2540 = vmatpush1.bf16.msra.mxu1 %v4463_v31 }
 0x54b   : > { %2541 = vmatprep.subr.bf16.mxu1 %v4471_v32 }
 0x54e   : > { %2542 = vmatpush1.bf16.msra.mxu1 %v4469_v33 }
 0x54f   : > { %2543 = vmatprep.subr.bf16.mxu1 %v4477_v35  ;;  %v4489_v35 = vld [vmem:[#allocation10 + $0xc] ss:$16 sps:$4 sm:$0xff]  }
 0x552   : > { %2544 = vmatpush1.bf16.msra.mxu1 %v4475_v37  ;;  %v4495_v37 = vld [vmem:[#allocation10 + $0x2c] ss:$16 sps:$4 sm:$0xff]  }
 0x553   : > { %2545 = vmatprep.subr.bf16.mxu1 %v4483_v39  ;;  %v4501_v39 = vld [vmem:[#allocation10 + $0x4c] ss:$16 sps:$4 sm:$0xff]  }
 0x556   : > { %2546 = vmatpush1.bf16.msra.mxu1 %v4481_v41  ;;  %v4507_v41 = vld [vmem:[#allocation10 + $0x6c] ss:$16 sps:$4 sm:$0xff]  }
 0x5ec   : > { %v2057_v49 = vpop.f32.mrb[8].mxu1 }
 0x5ed   : > { %v2078_v50 = vadd.f32 %v2071_v47, %v2057_v49  ;;  %v2059_v51 = vpop.f32.mrb[9].mxu1  ;;  %v4519_v49 = vld [vmem:[#allocation10 + $0xac] ss:$16 sps:$4 sm:$0xff]  }
 0x5ee   : > { %v2079_v52 = vadd.f32 %v2075_v48, %v2059_v51  ;;  %v2061_v53 = vpop.f32.mrb[10].mxu1  ;;  %v4523_v51 = vld [vmem:[#allocation10 + $0xc8] ss:$16 sps:$4 sm:$0xff]  }
 0x5ef   : > { %v2080_v54 = vadd.f32 %v2071_v47, %v2061_v53  ;;  %v2063_v55 = vpop.f32.mrb[11].mxu1  ;;  %v2082_v57 = vmax.f32 %v2078_v50, 0.0  ;;  %v4513_v47 = vld [vmem:[#allocation10 + $0x8c] ss:$16 sps:$4 sm:$0xff]   ;;  %v4517_v50 = vld [vmem:[#allocation10 + $0xa8] ss:$16 sps:$4 sm:$0xff]  }
 0x5f0   : > { %v2081_v56 = vadd.f32 %v2075_v48, %v2063_v55  ;;  %v2083_v59 = vmax.f32 %v2079_v52, 0.0  ;;  %v4511_v48 = vld [vmem:[#allocation10 + $0x88] ss:$16 sps:$4 sm:$0xff]   ;;  %v4531_v52 = vld [vmem:[#allocation10 + $0xec] ss:$16 sps:$4 sm:$0xff]  }
 0x5f1   : > { %v2084_v58 = vmax.f32 %v2080_v54, 0.0  ;;  %v4529_v53 = vld [vmem:[#allocation10 + $0xe8] ss:$16 sps:$4 sm:$0xff]   ;;  %v4537_v54 = vld [vmem:[#allocation10 + $0x10c] ss:$16 sps:$4 sm:$0xff]  }
 0x5f2   : > { %v2085_v60 = vmax.f32 %v2081_v56, 0.0  ;;  %v4535_v55 = vld [vmem:[#allocation10 + $0x108] ss:$16 sps:$4 sm:$0xff]   ;;  %v4543_v56 = vld [vmem:[#allocation10 + $0x12c] ss:$16 sps:$4 sm:$0xff]  }
 0x5f3   : > { %v2086_v61 = vpack.c.bf16 %v2084_v58, %v2082_v57  ;;  %v4541_v57 = vld [vmem:[#allocation10 + $0x128] ss:$16 sps:$4 sm:$0xff]   ;;  %v4549_v58 = vld [vmem:[#allocation10 + $0x14c] ss:$16 sps:$4 sm:$0xff]  }
 0x5f4   : > { %v2087_v62 = vpack.c.bf16 %v2085_v60, %v2083_v59  ;;  %v4547_v59 = vld [vmem:[#allocation10 + $0x148] ss:$16 sps:$4 sm:$0xff]   ;;  %v4555_v60 = vld [vmem:[#allocation10 + $0x16c] ss:$16 sps:$4 sm:$0xff]  }
 0x5f6   : > { %2504 = vmatprep.mubr.bf16.mxu0 %v2087_v62  ;;  %2547 = vmatprep.mubr.bf16.mxu1 %v2087_v62  ;;  %v4561_v62 = vld [vmem:[#allocation10 + $0x18c] ss:$16 sps:$4 sm:$0xff]  }
 0x5f7   : > { %2505 = vmatmul.mubr.bf16.vlgmr.msra.gmra.mrb[12].mxu0 %v2086_v61  ;;  %2548 = vmatmul.mubr.bf16.vlgmr.msra.gmra.mrb[12].mxu1 %v2086_v61  ;;  %v4553_v61 = vld [vmem:[#allocation10 + $0x168] ss:$16 sps:$4 sm:$0xff]  }
 0x5f8   : > { %2592 = vmatprep.mubr.bf16.mxu1 %v4838_v0  ;;  %3010 = vmatpush1.bf16.msra.mxu0 %v4484_v63  ;;  %v4559_v63 = vld [vmem:[#allocation10 + $0x188] ss:$16 sps:$4 sm:$0xff]  }
 0x5f9   : > { %3011 = vmatprep.subr.bf16.mxu0 %v4492_v2  ;;  %v4565_v2 = vld [vmem:[#allocation10 + $0x1a8] ss:$16 sps:$4 sm:$0xff]  }
 0x5fc   : > { %3012 = vmatpush1.bf16.msra.mxu0 %v4490_v3  ;;  %v4570_v3 = vld [vmem:[#allocation10 + $0x1c4] ss:$16 sps:$4 sm:$0xff]  }
 0x5fd   : > { %3013 = vmatprep.subr.bf16.mxu0 %v4498_v4  ;;  %v4573_v4 = vld [vmem:[#allocation10 + $0x1cc] ss:$16 sps:$4 sm:$0xff]  }
 0x600   : > { %3014 = vmatpush1.bf16.msra.mxu0 %v4496_v5  ;;  %v4568_v5 = vld [vmem:[#allocation10 + $0x1c0] ss:$16 sps:$4 sm:$0xff]  }
 0x601   : > { %3015 = vmatprep.subr.bf16.mxu0 %v4504_v7  ;;  %v4571_v7 = vld [vmem:[#allocation10 + $0x1c8] ss:$16 sps:$4 sm:$0xff]  }
 0x604   : > { %3016 = vmatpush1.bf16.msra.mxu0 %v4502_v8  ;;  %v4576_v8 = vld [vmem:[#allocation10 + $0x1e4] ss:$16 sps:$4 sm:$0xff]  }
 0x605   : > { %3017 = vmatprep.subr.bf16.mxu0 %v4510_v9  ;;  %v4579_v9 = vld [vmem:[#allocation10 + $0x1ec] ss:$16 sps:$4 sm:$0xff]  }
 0x608   : > { %3018 = vmatpush1.bf16.msra.mxu0 %v4508_v10  ;;  %v4574_v10 = vld [vmem:[#allocation10 + $0x1e0] ss:$16 sps:$4 sm:$0xff]  }
 0x609   : > { %3019 = vmatprep.subr.bf16.mxu0 %v4516_v11  ;;  %v4577_v11 = vld [vmem:[#allocation10 + $0x1e8] ss:$16 sps:$4 sm:$0xff]  }
 0x60c   : > { %3020 = vmatpush1.bf16.msra.mxu0 %v4514_v12  ;;  %v2603_v12 = vld [vmem:[%s5352_s9] sm:$0x3] }
 0x60d   : > { %3021 = vmatprep.subr.bf16.mxu0 %v4522_v13  ;;  %v2608_v13 = vrot.slane %v2603_v12, %v5165_v44 }
 0x610   : > { %3022 = vmatpush1.bf16.msra.mxu0 %v4520_v14  ;;  %v2612_v14 = vrot.slane %v2603_v12, %v5171_v46  ;;  %v3980_v12 = vld [vmem:[%s5356_s13] ss:$0 sm:$0xff] }
 0x611   : > { %3023 = vmatprep.subr.bf16.mxu0 %v4528_v15 }
 0x614   : > { %3024 = vmatpush1.bf16.msra.mxu0 %v4526_v16 }
 0x615   : > { %3025 = vmatprep.subr.bf16.mxu0 %v4534_v17 }
 0x618   : > { %3026 = vmatpush1.bf16.msra.mxu0 %v4532_v18 }
 0x619   : > { %3027 = vmatprep.subr.bf16.mxu0 %v4540_v19 }
 0x61c   : > { %3028 = vmatpush1.bf16.msra.mxu0 %v4538_v20 }
 0x61d   : > { %3029 = vmatprep.subr.bf16.mxu0 %v4546_v21 }
 0x620   : > { %3030 = vmatpush1.bf16.msra.mxu0 %v4544_v22 }
 0x621   : > { %3031 = vmatprep.subr.bf16.mxu0 %v4552_v23 }
 0x624   : > { %3032 = vmatpush1.bf16.msra.mxu0 %v4550_v24 }
 0x625   : > { %3033 = vmatprep.subr.bf16.mxu0 %v4558_v25 }
 0x628   : > { %3034 = vmatpush1.bf16.msra.mxu0 %v4556_v26 }
 0x629   : > { %3035 = vmatprep.subr.bf16.mxu0 %v4564_v27 }
 0x62c   : > { %3036 = vmatpush1.bf16.msra.mxu0 %v4562_v28 }
 0x62d   : > { %3037 = vmatprep.subr.bf16.mxu0 %v4570_v3 }
 0x630   : > { %3038 = vmatpush1.bf16.msra.mxu0 %v4568_v5 }
 0x631   : > { %3039 = vmatprep.subr.bf16.mxu0 %v4576_v8 }
 0x634   : > { %3040 = vmatpush1.bf16.msra.mxu0 %v4574_v10 }
 0x6ca   : > { %v2506_v29 = vpop.f32.mrb[12].mxu0 }
 0x6cb   : > { %v2508_v30 = vpop.f32.mrb[13].mxu0 }
 0x6cc   : > { %v2510_v31 = vpop.f32.mrb[14].mxu0 }
 0x6cd   : > { %v2558_v32 = vpack.c.bf16 %v2510_v31, %v2506_v29  ;;  %v2512_v33 = vpop.f32.mrb[15].mxu0 }
 0x6ce   : > { %v2559_v34 = vpack.c.bf16 %v2512_v33, %v2508_v30 }
 0x6d0   : > { %2560 = vmatprep.subr.bf16.mxu1 %v2559_v34 }
 0x6d1   : > { %2561 = vmatpush1.bf16.msra.mxu1 %v2558_v32 }
 0x6d2   : > { %3052 = vmatprep.subr.bf16.mxu1 %v4489_v35  ;;  %v4614_v35 = vld [vmem:[%s5147_s20] sm:$0xff]  }
 0x6d4   : > { %3914 = vmatmul.mubr.msk.bf16.vlgmr.msra.gmra.mrb[12].mxu1 %vm945_vm0, %v5157_v6  ;;  %v4525_v6 = vld [vmem:[#allocation10 + $0xcc] ss:$16 sps:$4 sm:$0xff]  }
 0x6d5   : > { %3053 = vmatpush1.bf16.msra.mxu1 %v4487_v36  ;;  %v3140_v36 = vld [vmem:[%s5354_s11] sm:$0x3] }
 0x6d6   : > { %3054 = vmatprep.subr.bf16.mxu1 %v4495_v37  ;;  %v3160_v37 = vld [vmem:[%s5355_s12] sm:$0xf] }
 0x6d9   : > { %3055 = vmatpush1.bf16.msra.mxu1 %v4493_v38  ;;  %v3169_v38 = vsub.s32 2, %v5162_v43 }
 0x6da   : > { %3056 = vmatprep.subr.bf16.mxu1 %v4501_v39  ;;  %v3145_v39 = vrot.slane %v3140_v36, %v5165_v44 }
 0x6dd   : > { %3057 = vmatpush1.bf16.msra.mxu1 %v4499_v40  ;;  %v3202_v40 = vrot.slane %v3160_v37, %v5171_v46 }
 0x6de   : > { %3058 = vmatprep.subr.bf16.mxu1 %v4507_v41  ;;  %v3166_v41 = vrot.slane %v3160_v37, %v5165_v44 }
 0x6e1   : > { %3059 = vmatpush1.bf16.msra.mxu1 %v4505_v45  ;;  %v3149_v45 = vrot.slane %v3140_v36, %v5171_v46 }
 0x6e2   : > { %3060 = vmatprep.subr.bf16.mxu1 %v4513_v47 }
 0x6e5   : > { %3061 = vmatpush1.bf16.msra.mxu1 %v4511_v48  ;;  %v3170_v48 = vrot.slane %v3160_v37, %v3169_v38 }
 0x6e6   : > { %3062 = vmatprep.subr.bf16.mxu1 %v4519_v49 }
 0x6e9   : > { %3063 = vmatpush1.bf16.msra.mxu1 %v4517_v50 }
 0x6ea   : > { %3064 = vmatprep.subr.bf16.mxu1 %v4525_v6 }
 0x6ed   : > { %3065 = vmatpush1.bf16.msra.mxu1 %v4523_v51  ;;  %v3212_v51 = vrot.slane %v3202_v40, %v5171_v46 }
 0x6ee   : > { %3066 = vmatprep.subr.bf16.mxu1 %v4531_v52  ;;  %v3176_v52 = vrot.slane %v3166_v41, %v5165_v44 }
 0x6f1   : > { %3067 = vmatpush1.bf16.msra.mxu1 %v4529_v53 }
 0x6f2   : > { %3068 = vmatprep.subr.bf16.mxu1 %v4537_v54 }
 0x6f5   : > { %3069 = vmatpush1.bf16.msra.mxu1 %v4535_v55 }
 0x6f6   : > { %3070 = vmatprep.subr.bf16.mxu1 %v4543_v56  ;;  %v3180_v56 = vrot.slane %v3170_v48, %v5165_v44 }
 0x6f9   : > { %3071 = vmatpush1.bf16.msra.mxu1 %v4541_v57 }
 0x6fa   : > { %3072 = vmatprep.subr.bf16.mxu1 %v4549_v58 }
 0x6fd   : > { %3073 = vmatpush1.bf16.msra.mxu1 %v4547_v59 }
 0x6fe   : > { %3074 = vmatprep.subr.bf16.mxu1 %v4555_v60 }
 0x701   : > { %3075 = vmatpush1.bf16.msra.mxu1 %v4553_v61 }
 0x702   : > { %3076 = vmatprep.subr.bf16.mxu1 %v4561_v62 }
 0x705   : > { %3077 = vmatpush1.bf16.msra.mxu1 %v4559_v63 }
 0x706   : > { %3078 = vmatprep.subr.bf16.mxu1 %v4567_v1 }
 0x709   : > { %3079 = vmatpush1.bf16.msra.mxu1 %v4565_v2 }
 0x70a   : > { %3080 = vmatprep.subr.bf16.mxu1 %v4573_v4 }
 0x70d   : > { %3081 = vmatpush1.bf16.msra.mxu1 %v4571_v7 }
 0x70e   : > { %3082 = vmatprep.subr.bf16.mxu1 %v4579_v9 }
 0x711   : > { %3083 = vmatpush1.bf16.msra.mxu1 %v4577_v11 }
 0x7a7   : > { %v2594_v15 = vpop.f32.mrb[12].mxu1 }
 0x7a8   : > { %v2615_v16 = vadd.f32 %v2608_v13, %v2594_v15  ;;  %v2596_v17 = vpop.f32.mrb[13].mxu1 }
 0x7a9   : > { %v2616_v18 = vadd.f32 %v2612_v14, %v2596_v17  ;;  %v2598_v19 = vpop.f32.mrb[14].mxu1 }
 0x7aa   : > { %v2617_v20 = vadd.f32 %v2608_v13, %v2598_v19  ;;  %v2600_v21 = vpop.f32.mrb[15].mxu1  ;;  %v2619_v23 = vmax.f32 %v2615_v16, 0.0 }
 0x7ab   : > { %v2618_v22 = vadd.f32 %v2612_v14, %v2600_v21  ;;  %v2620_v25 = vmax.f32 %v2616_v18, 0.0 }
 0x7ac   : > { %v2621_v24 = vmax.f32 %v2617_v20, 0.0 }
 0x7ad   : > { %v2622_v26 = vmax.f32 %v2618_v22, 0.0 }
 0x7ae   : > { %v2623_v27 = vpack.c.bf16 %v2621_v24, %v2619_v23 }
 0x7af   : > { %v2624_v28 = vpack.c.bf16 %v2622_v26, %v2620_v25  ;;  %v4580_v25 = vld [vmem:[%s5357_s14 + $0x40] sm:$0xff]  }
 0x7b0   : > { %v4581_v26 = vld [vmem:[%s5357_s14] sm:$0xff]   ;;  %4007 = vmatprep.subr.bf16.mxu0 %v4580_v25 }
 0x7b1   : > { %3041 = vmatprep.mubr.bf16.mxu0 %v2624_v28  ;;  %3084 = vmatprep.mubr.bf16.mxu1 %v2624_v28  ;;  %v4583_v28 = vld [vmem:[%s5357_s14 + $0x8] sm:$0xff]  }
 0x7b2   : > { %3042 = vmatmul.mubr.bf16.vlgmr.msra.gmra.mrb[16].mxu0 %v2623_v27  ;;  %3085 = vmatmul.mubr.bf16.vlgmr.msra.gmra.mrb[16].mxu1 %v2623_v27  ;;  %v4582_v27 = vld [vmem:[%s5357_s14 + $0x48] sm:$0xff]  }
 0x7b3   : > { %3129 = vmatprep.mubr.bf16.mxu1 %v4838_v0  ;;  %v3205_v0 = vsub.s32 3, %v5162_v43  ;;  %4008 = vmatpush3.bf16.msra.mxu0 %v4581_v26 }
 0x7b4   : > { %4009 = vmatprep.subr.bf16.mxu0 %v4582_v27 }
 0x7b5   : > { %v3206_v47 = vrot.slane %v3160_v37, %v3205_v0 }
 0x7b7   : > { %v3216_v55 = vrot.slane %v3206_v47, %v5171_v46  ;;  %4010 = vmatpush3.bf16.msra.mxu0 %v4583_v28 }
 0x885   : > { %v3043_v29 = vpop.f32.mrb[16].mxu0 }
 0x886   : > { %v3045_v30 = vpop.f32.mrb[17].mxu0 }
 0x887   : > { %v3047_v31 = vpop.f32.mrb[18].mxu0 }
 0x888   : > { %v3095_v32 = vpack.c.bf16 %v3047_v31, %v3043_v29  ;;  %v3049_v33 = vpop.f32.mrb[19].mxu0  ;;  %v4584_v29 = vld [vmem:[%s5357_s14 + $0x50] sm:$0xff]  }
 0x889   : > { %v3096_v34 = vpack.c.bf16 %v3049_v33, %v3045_v30  ;;  %4011 = vmatprep.subr.bf16.mxu0 %v4584_v29 }
 0x88b   : > { %3097 = vmatprep.subr.bf16.mxu1 %v3096_v34 }
 0x88c   : > { %3098 = vmatpush1.bf16.msra.mxu1 %v3095_v32 }
 0x88f   : > { %3979 = vmatmul.mubr.msk.bf16.vlgmr.msra.gmra.mrb[16].mxu1 %vm945_vm0, %v4614_v35 }
 0x962   : > { %v3131_v49 = vpop.f32.mrb[16].mxu1 }
 0x963   : > { %v3152_v50 = vadd.f32 %v3145_v39, %v3131_v49  ;;  %v3133_v6 = vpop.f32.mrb[17].mxu1 }
 0x964   : > { %v3153_v53 = vadd.f32 %v3149_v45, %v3133_v6  ;;  %v3135_v54 = vpop.f32.mrb[18].mxu1 }
 0x965   : > { %v5218_v57 = vmax.f32 %v3152_v50, 0.0  ;;  %v3154_v58 = vadd.f32 %v3145_v39, %v3135_v54  ;;  %v3137_v59 = vpop.f32.mrb[19].mxu1 }
 0x966   : > { %v5220_v60 = vmax.f32 %v3153_v53, 0.0  ;;  %v3155_v61 = vadd.f32 %v3149_v45, %v3137_v59 }
 0x967   : > { %v5222_v62 = vmax.f32 %v3154_v58, 0.0  ;;  %v3217_v63 = vmul.f32 %v3212_v51, %v5218_v57  ;;  %v3181_v1 = vmul.f32 %v3176_v52, %v5218_v57 }
 0x968   : > { %v5226_v2 = vmax.f32 %v3155_v61, 0.0  ;;  %v3218_v3 = vmul.f32 %v3216_v55, %v5220_v60  ;;  %v3182_v46 = vmul.f32 %v3180_v56, %v5220_v60 }
 0x969   : > { %v3219_v44 = vmul.f32 %v3212_v51, %v5222_v62  ;;  %v3183_v4 = vmul.f32 %v3176_v52, %v5222_v62 }
 0x96a   : > { %v3221_v5 = vadd.f32 %v3218_v3, %v3217_v63  ;;  %v3185_v7 = vadd.f32 %v3182_v46, %v3181_v1  ;;  %v3220_v8 = vmul.f32 %v3216_v55, %v5226_v2  ;;  %v3184_v9 = vmul.f32 %v3180_v56, %v5226_v2 }
 0x96c   : > { %3222 = vadd.xlane.f32.xlu0 %v3221_v5  ;;  %3186 = vadd.xlane.f32.xlu1 %v3185_v7  ;;  %v3224_v10 = vadd.f32 %v3220_v8, %v3219_v44  ;;  %v3188_v11 = vadd.f32 %v3184_v9, %v3183_v4  ;;  %v4585_v8 = vld [vmem:[%s5357_s14 + $0x10] sm:$0xff]   ;;  %v4586_v9 = vld [vmem:[%s5357_s14 + $0x58] sm:$0xff]  }
 0x96d   : > { %4012 = vmatpush3.bf16.msra.mxu0 %v4585_v8 }
 0x96e   : > { %4013 = vmatprep.subr.bf16.mxu0 %v4586_v9 }
 0x970   : > { %3225 = vadd.xlane.f32.xlu0 %v3224_v10  ;;  %3189 = vadd.xlane.f32.xlu1 %v3188_v11  ;;  %v4587_v11 = vld [vmem:[%s5357_s14 + $0x18] sm:$0xff]  }
 0x971   : > { %4014 = vmatpush3.bf16.msra.mxu0 %v4587_v11 }
 0x9f9   : > { %v3223_v13 = vpop.xlane.xlu0 %3222  ;;  %v3187_v30 = vpop.xlane.xlu1 %3186 }
 0x9fa   : > { %v3227_v14 = vadd.f32 %v3980_v12, %v3223_v13  ;;  %v3197_v32 = vadd.f32 %v3980_v12, %v3187_v30  ;;  %v4589_v13 = vld [vmem:[%s5357_s14 + $0x20] sm:$0xff]  }
 0x9fc   : > { %v3981_v15 = vmul.f32 -1.442695, %v3227_v14  ;;  %v4590_v14 = vld [vmem:[%s5357_s14 + $0x68] sm:$0xff]  }
 0x9fd   : > { %v3226_v16 = vpop.xlane.xlu0 %3225  ;;  %v3190_v31 = vpop.xlane.xlu1 %3189 }
 0x9fe   : > { %4596 = vpow2.f32 %v3981_v15  ;;  %v3228_v17 = vadd.f32 %v3980_v12, %v3226_v16  ;;  %v3198_v33 = vadd.f32 %v3980_v12, %v3190_v31  ;;  %v4588_v12 = vld [vmem:[%s5357_s14 + $0x60] sm:$0xff]   ;;  %v4591_v15 = vld [vmem:[%s5357_s14 + $0x28] sm:$0xff]   ;;  %v4592_v16 = vld [vmem:[%s5357_s14 + $0x70] sm:$0xff]  }
 0x9ff   : > { %4015 = vmatprep.subr.bf16.mxu0 %v4588_v12 }
 0xa00   : > { %v3982_v18 = vmul.f32 -1.442695, %v3228_v17  ;;  %4016 = vmatpush3.bf16.msra.mxu0 %v4589_v13  ;;  %v4593_v17 = vld [vmem:[%s5357_s14 + $0x30] sm:$0xff]  }
 0xa01   : > { %4017 = vmatprep.subr.bf16.mxu0 %v4590_v14 }
 0xa02   : > { %4598 = vpow2.f32 %v3982_v18  ;;  %v4594_v18 = vld [vmem:[%s5357_s14 + $0x78] sm:$0xff]  }
 0xa04   : > { %4018 = vmatpush3.bf16.msra.mxu0 %v4591_v15 }
 0xa05   : > { %4019 = vmatprep.subr.bf16.mxu0 %v4592_v16 }
 0xa08   : > { %v4597_v19 = vpop.eup %4596  ;;  %4020 = vmatpush3.bf16.msra.mxu0 %v4593_v17 }
 0xa09   : > { %v3237_v20 = vadd.f32 1.0, %v4597_v19  ;;  %v4595_v19 = vld [vmem:[%s5357_s14 + $0x38] sm:$0xff]   ;;  %4021 = vmatprep.subr.bf16.mxu0 %v4594_v18 }
 0xa0b   : > { %4600 = vrcp.f32 %v3237_v20 }
 0xa0c   : > { %v4599_v21 = vpop.eup %4598  ;;  %4022 = vmatpush3.bf16.msra.mxu0 %v4595_v19 }
 0xa0d   : > { %v3238_v22 = vadd.f32 1.0, %v4599_v21 }
 0xa0f   : > { %4602 = vrcp.f32 %v3238_v22 }
 0xa10   : > { %4604 = vtanh.f32 %v3197_v32  ;;  %v4840_v32 = vmov 1966171168  }
 0xa11   : > { %4606 = vtanh.f32 %v3198_v33  ;;  %v3313_v33 = vunpack.c.l.s4 %v4840_v32 }
 0xa15   : > { %v4601_v23 = vpop.eup %4600 }
 0xa16   : > { %3245 = vrot.lane.b32.xlu0 %v4601_v23, %s4839_s15 }
 0xa19   : > { %v4603_v24 = vpop.eup %4602 }
 0xa1a   : > { %3247 = vrot.lane.b32.xlu1 %v4603_v24, %s4839_s15  ;;  %v4605_v35 = vpop.eup %4604  ;;  %s628_s15 = sand.u32 1, %s5403_s4  }
 0xa1b   : > { %v4607_v37 = vpop.eup %4606  ;;  %s3680_s1 = sshll.u32 %s628_s15, 1  ;;  %s3506_s26 = scalar_lea.sflag [#allocation4], %s628_s15 }
 0xa1c   : > { %s630_s22 = scalar_lea.vmem [#allocation11], %s3680_s1 }
 0xa1d   : > { %s3523_s19 = sshll.u32 %s630_s22, 4  ;;  %s3524_s19 = int_to_ptr.vmem [resolvable:$true] %s3523_s19 }
 0xa1e   : > { %s4755_s21 = scalar_lea.vmem %s3524_s19, 32  ;;  %p4762_p6 = scmp.lt.s32.totalorder %s3524_s19, %s4760_s0 }
 0xa1f   : > { %p4756_p8 = scmp.ne.s32.totalorder %s3524_s19, %s4755_s21  ;;  %p4763_p9 = scmp.lt.s32.totalorder %s4761_s24, %s4755_s21 }
 0xa21   : > { %p4757_p13 = pnand %p4756_p8, %p5406_p11  ;;  %p4764_p5 = por %p4763_p9, %p4762_p6 }
 0xa23   : > { %p4758_p1 = pneg %p4757_p13 }
 0xa25   : > { %p4765_p0 = pnand %p4764_p5, %p4758_p1 }
 0xa88   : > { %v3246_v34 = vpop.permute.xlu0 %3245 }
 0xa89   : > { %v3251_v36 = vmul.f32 %v4605_v35, %v3246_v34 }
 0xa8b   : > { %v3254_v39 = vsel %vm3253_vm1, %v3251_v36, -inf }
 0xa8c   : > { %v3248_v0 = vpop.permute.xlu1 %3247 }
 0xa8d   : > { %v3252_v38 = vmul.f32 %v4607_v37, %v3248_v0 }
 0xa8f   : > { %v3255_v40 = vsel %vm3253_vm1, %v3252_v38, -inf }
 0xa90   : > { %v3256_v41 = vmax.f32 %v3254_v39, %v3255_v40 }
 0xa92   : > { %v3257_v45 = vrot.slane %v3256_v41, 4 }
 0xa94   : > { %v3258_v47 = vmax.f32 %v3256_v41, %v3257_v45 }
 0xa96   : > { %v3259_v48 = vrot.slane %v3258_v47, 2 }
 0xa98   : > { %v3260_v49 = vmax.f32 %v3258_v47, %v3259_v48 }
 0xa9a   : > { %v3261_v50 = vrot.slane %v3260_v49, 1 }
 0xa9c   : > { %v3262_v6 = vmax.f32 %v3260_v49, %v3261_v50 }
 0xa9e   : > { %v3263_v51 = vsub.f32 %v3251_v36, %v3262_v6  ;;  %v3264_v52 = vsub.f32 %v3252_v38, %v3262_v6 }
 0xaa0   : > { %v3265_v53 = vmul.f32 1.442695, %v3263_v51  ;;  %v3267_v54 = vmul.f32 1.442695, %v3264_v52 }
 0xaa2   : > { %4608 = vpow2.f32 %v3265_v53 }
 0xaa3   : > { %4610 = vpow2.f32 %v3267_v54 }
 0xaac   : > { %v4609_v55 = vpop.eup %4608 }
 0xaad   : > { %v4611_v56 = vpop.eup %4610  ;;  %v3269_v58 = vsel %vm3253_vm1, %v4609_v55, 0.0 }
 0xaae   : > { %v3270_v59 = vsel %vm3253_vm1, %v4611_v56, 0.0 }
 0xaaf   : > { %v3271_v61 = vadd.f32 %v3270_v59, %v3269_v58 }
 0xab1   : > { %v3272_v63 = vrot.slane %v3271_v61, 4 }
 0xab3   : > { %v3273_v1 = vadd.f32 %v3272_v63, %v3271_v61 }
 0xab5   : > { %v3274_v3 = vrot.slane %v3273_v1, 2 }
 0xab7   : > { %v3275_v46 = vadd.f32 %v3274_v3, %v3273_v1 }
 0xab9   : > { %v3276_v44 = vrot.slane %v3275_v46, 1 }
 0xabb   : > { %v3277_v4 = vadd.f32 %v3276_v44, %v3275_v46 }
 0xabd   : > { %4612 = vrcp.f32 %v3277_v4 }
 0xac7   : > { %v4613_v5 = vpop.eup %4612 }
 0xac8   : > { %v3279_v7 = vmul.f32 %v4613_v5, %v4609_v55  ;;  %v3280_v10 = vmul.f32 %v4613_v5, %v4611_v56 }
 0xaca   : > { %3283 = vperm.xlu1 %4144, %v3279_v7  }
 0xace   : > { %3288 = vperm.xlu1 %4144, %v3280_v10  }
 0xb49   : > { %v3284_v20 = vpop.permute.xlu1 %3283 }
 0xb4a   : > { %v3291_v22 = vmul.f32 %v3284_v20, %v5218_v57  ;;  %v3292_v23 = vmul.f32 %v3284_v20, %v5220_v60  ;;  %v3314_v57 = vunpack.c.0.s8 %v3313_v33 }
 0xb4c   : > { %v3317_v38 = vsub.s32 %v3314_v57, %v5162_v43 }
 0xb4d   : > { %v3289_v21 = vpop.permute.xlu1 %3288 }
 0xb4e   : > { %v3293_v24 = vmul.f32 %v3289_v21, %v5222_v62  ;;  %v3294_v25 = vmul.f32 %v3289_v21, %v5226_v2 }
 0xb50   : > { %v3295_v26 = vadd.f32 %v3293_v24, %v3291_v22  ;;  %v3302_v27 = vadd.f32 %v3294_v25, %v3292_v23 }
 0xb52   : > { %v3296_v28 = vrot.slane %v3295_v26, 4  ;;  %v3303_v29 = vrot.slane %v3302_v27, 4 }
 0xb54   : > { %v3297_v30 = vadd.f32 %v3296_v28, %v3295_v26  ;;  %v3304_v31 = vadd.f32 %v3303_v29, %v3302_v27 }
 0xb56   : > { %v3298_v34 = vrot.slane %v3297_v30, 2  ;;  %v3305_v35 = vrot.slane %v3304_v31, 2 }
 0xb58   : > { %v3299_v36 = vadd.f32 %v3298_v34, %v3297_v30  ;;  %v3306_v37 = vadd.f32 %v3305_v35, %v3304_v31 }
 0xb5a   : > { %v3300_v0 = vrot.slane %v3299_v36, 1  ;;  %v3307_v60 = vrot.slane %v3306_v37, 1 }
 0xb5c   : > { %v3301_v62 = vadd.f32 %v3300_v0, %v3299_v36  ;;  %v3308_v2 = vadd.f32 %v3307_v60, %v3306_v37 }
 0xb5e   : > { %v3311_v39 = vcombine.low %v3301_v62, %v3308_v2  ;;  %v3333_v40 = vpack.c.bf16 %v3308_v2, %v3308_v2  ;;  %v3332_v41 = vpack.c.bf16 %v3301_v62, %v3301_v62 }
 0xb60   : > { %v3318_v45 = vrot.slane %v3311_v39, %v3317_v38  ;;  %3495 = vmatprep.mubr.bf16.mxu0 %v3333_v40 }
 0xb61   : > { %3496 = vmatmul.mubr.bf16.vlgmr.msra.gmra.mrb[20].mxu0 %v3332_v41 }
 0xb62   : > { %v3325_v47 = vrot.slane %v3318_v45, %v3317_v38 }
 0xb64   : > { %3331 = vst.msk [vmem:[%s630_s22] sm:$0x3] %vm3329_vm2, %v3325_v47 }
 0xb65   : > { %4768 = shalt.err (!%p4765_p0)
}
 0xb66   : > { %s4769_s28 = scalar_lea.hbm %s5300_s25, 32  ;;  %s4773_s15 = scalar_lea.hbm %s5405_s18, 128 }
 0xb67   : > { %p4770_p10 = scmp.ne.s32.totalorder %s5300_s25, %s4769_s28  ;;  %p4774_p4 = scmp.lt.u32.totalorder %s5300_s25, %s5405_s18 }
 0xb68   : > { %p4775_p12 = scmp.lt.u32.totalorder %s4773_s15, %s4769_s28  ;;  %p4777_p8 = scmp.lt.u32.totalorder %s4769_s28, %s5300_s25 }
 0xb69   : > { %p4771_p2 = pnand %p4770_p10, %p5406_p11 }
 0xb6a   : > { %p4776_p7 = por %p4775_p12, %p4774_p4 }
 0xb6b   : > { %p4772_p3 = pneg %p4771_p2 }
 0xb6c   : > { %p4778_p13 = por %p4777_p8, %p4776_p7 }
 0xb6e   : > { %p4779_p1 = pnand %p4778_p13, %p4772_p3 }
 0xb70   : > { %4782 = shalt.err (!%p4779_p1)
}
 0xb71   : > { %4069 = dma.vmem_to_hbm [thread:$0]  (%p5406_p11), %s3524_s19, 32, %s5300_s25, %s3506_s26   ;;  %vm3503_vm3 = vcmask 8192  }
 0xb72   : > { %s5407_s23 = sld [smem:[#allocation27_spill]]  ;;  %s5408_s0 = sld [smem:[#allocation29_spill]] }
 0xb78   : > { %v3366_v43 = vld [vmem:[%s5407_s23] sm:$0x1]  ;;  %s648_s24 = scalar_lea.vmem %s5408_s0, %s5141_s17 }
 0xc34   : > { %v4023_v42 = vpop.f32.mrb[20].mxu0 }
 0xc35   : > { %v4024_v48 = vpop.f32.mrb[21].mxu0 }
 0xc36   : > { %v4025_v49 = vadd.f32 %v4024_v48, %v4023_v42  ;;  %v4026_v50 = vpop.f32.mrb[22].mxu0 }
 0xc37   : > { %v4027_v6 = vpop.f32.mrb[23].mxu0 }
 0xc38   : > { %v3498_v51 = vadd.f32 %v4025_v49, %v3366_v43 }
 0xc3a   : > { %3504 = vst.msk [vmem:[%s648_s24] sm:$0x1] %vm3503_vm3, %v3498_v51 }
 0xc3b PF: > { %s5409_s16 = sld [smem:[#allocation19_spill]]  ;;  %s5410_s28 = sld [smem:[#allocation16_spill]] }
 0xc3c   : > { %s5411_s19 = sld [smem:[#allocation23_spill]] }
 0xc41   : > { %p4101_p11 = scmp.ge.s32.totalorder %s5409_s16, 2  ;;  %s3538_s25 = sand.u32 1, %s5410_s28  }
 0xc42   : > { %p5412_p6 = scmp.ne.s32.totalorder %s5411_s19, 0  ;;  %s3539_s26 = scalar_lea.sflag [#allocation4], %s3538_s25 }
 0xc44   : > { %p4088_p9 = pnand %p4101_p11, %p5412_p6 }
 0xc46   : > { %4812 = dma.done.wait (!%p4088_p9), %s3539_s26, 32  }
 0xc47   : > { %4814 = vsyncadd (!%p4088_p9), %s3539_s26, 4294967264  ;;  %s5413_s27 = sld [smem:[#allocation20_spill]]  ;;  %s5414_s24 = sld [smem:[#allocation17_spill]] }
 0xc48   : > { %s5415_s25 = sld [smem:[#allocation18_spill]]  ;;  %s5416_s26 = sld [smem:[#allocation21_spill]] }
 0xc4d   : > { %p31_p5 = scmp.ge.s32.totalorder %s5413_s27, 6  }
 0xc4f   :  { %33 = sbr.rel (!%p31_p5) target bundleno = 13 (0xd), region = 155 }
 0xc56   :  { %3550 = vsyncpa [#allocation3], 1 }
 0xc57   :  { %3552 = vsyncpa [#allocation3 + $0x1], 1 }
 0xc58   :  { %3553 = vsyncpa [#allocation6], 1 }
 0xc59   :  { %3554 = vsyncpa [#allocation9], 1 }
 0xc5a   :  { %3555 = vsyncpa [#allocation4], 1 }
 0xc5b   :  { %3557 = vsyncpa [#allocation4 + $0x1], 1 }

</bundles_post_ra>
